<compile_context>
chip_gen: v6e
topology: v6e:2x2x1
jax: 0.10.0
libtpu: 0.0.40
codegen_flags: <defaults>
</compile_context>

<pallas_src>
import functools
import math

import jax
import jax.numpy as jnp
from jax import lax
from jax.experimental import pallas as pl
from jax.experimental.pallas import tpu as pltpu

_INV_SQRT2 = 0.7071067811865476


# --------------------------------------------------------------------------
# In-kernel helpers (all f32 VPU math)
# --------------------------------------------------------------------------
def _gelu(x):
    # exact erf form == nn.GELU() default
    return 0.5 * x * (1.0 + lax.erf(x * _INV_SQRT2))


def _layer_norm(x, w, b, eps=1e-5):
    mu = jnp.mean(x, axis=-1, keepdims=True)
    xc = x - mu
    var = jnp.mean(xc * xc, axis=-1, keepdims=True)
    return xc * lax.rsqrt(var + eps) * w + b


# --------------------------------------------------------------------------
# Fused Pallas kernel
# --------------------------------------------------------------------------
def _caf_kernel(main_ref, aux_ref, vecs_ref, fb1_ref, w_ref, fw2_ref,
                out_ref, kv_ref, *, num_heads):
    f32 = jnp.float32
    bf16 = jnp.bfloat16

    main = main_ref[...].astype(f32)               # (TQ, E)
    TQ, E = main.shape
    H = fb1_ref.shape[-1]
    hd = E // num_heads
    scale = 1.0 / math.sqrt(hd)

    # ---- packed small vectors: one lane-dense (16, E) slab ----------------
    lnm_w = vecs_ref[0:1, :]
    lnm_b = vecs_ref[1:2, :]
    lna_w = vecs_ref[2:3, :]
    lna_b = vecs_ref[3:4, :]
    bq = vecs_ref[4:5, :]
    bk = vecs_ref[5:6, :]
    bv = vecs_ref[6:7, :]
    bo = vecs_ref[7:8, :]
    g1 = vecs_ref[8:9, :]
    gb1 = vecs_ref[9:10, :]
    gw2 = vecs_ref[10:11, :]
    fb2 = vecs_ref[11:12, :]
    g2 = vecs_ref[12:13, :]
    gb2 = vecs_ref[13:14, 0:1]                     # (1, 1) scalar

    # ---- LN(aux) + fused K|V projection: computed ONCE per batch element --
    @pl.when(pl.program_id(1) == 0)
    def _():
        aux = aux_ref[...].astype(f32)             # (S, E)
        na = _layer_norm(aux, lna_w, lna_b)
        kv = jnp.dot(na.astype(bf16), w_ref[:, E:3 * E],   # (S, 2E), N=2E dot
                     preferred_element_type=f32)
        kv = kv + jnp.concatenate([bk, bv], axis=1)
        kv_ref[...] = kv.astype(bf16)

    kv = kv_ref[...]                               # (S, 2E) bf16 (cached)

    # ---- query-side LayerNorm + Q projection (scale & bias folded in) -----
    nm = _layer_norm(main, lnm_w, lnm_b)
    q = (jnp.dot(nm.astype(bf16), w_ref[:, 0:E],
                 preferred_element_type=f32) + bq) * scale

    # ---- multi-head cross attention; heads folded into the out-projection -
    attn = None
    for h in range(num_heads):
        q_h = q[:, h * hd:(h + 1) * hd].astype(bf16)        # (TQ, hd)
        k_h = kv[:, h * hd:(h + 1) * hd]                     # (S,  hd)
        v_h = kv[:, E + h * hd:E + (h + 1) * hd]             # (S,  hd)
        sc = lax.dot_general(q_h, k_h, (((1,), (1,)), ((), ())),
                             preferred_element_type=f32)     # (TQ, S)
        sc = sc - jnp.max(sc, axis=-1, keepdims=True)
        p = jnp.exp(sc)
        p = p * pl.reciprocal(jnp.sum(p, axis=-1, keepdims=True), approx=True)
        head = jnp.dot(p.astype(bf16), v_h, preferred_element_type=f32)
        wo_h = w_ref[h * hd:(h + 1) * hd, 3 * E:4 * E]       # (hd, E) bf16
        contrib = jnp.dot(head.astype(bf16), wo_h, preferred_element_type=f32)
        attn = contrib if attn is None else attn + contrib
    attn = attn + bo                                          # (TQ, E)

    attn_output = main + g1 * attn

    # ---- gate MLP: Linear(cat([attn_out, main])) split into two matmuls ---
    gh = (jnp.dot(attn_output.astype(bf16), w_ref[:, 4 * E:5 * E],
                  preferred_element_type=f32)
          + jnp.dot(main.astype(bf16), w_ref[:, 5 * E:6 * E],
                    preferred_element_type=f32)
          + gb1)
    gh = _gelu(gh)
    glogit = jnp.sum(gh * gw2, axis=-1, keepdims=True) + gb2
    gate = pl.reciprocal(1.0 + jnp.exp(-glogit), approx=True)   # sigmoid
    gate_output = gate * attn_output + (1.0 - gate) * main

    # ---- FFN branch (norm_main is reused, per the PyTorch module) ---------
    ng = _layer_norm(gate_output, lnm_w, lnm_b)
    f = _gelu(jnp.dot(ng.astype(bf16), w_ref[:, 6 * E:6 * E + H],
                      preferred_element_type=f32) + fb1_ref[...])
    f = jnp.dot(f.astype(bf16), fw2_ref[...], preferred_element_type=f32) + fb2

    out_ref[...] = (gate_output + g2 * f).astype(out_ref.dtype)
    # NOTE: attn_dropout / ffn dropouts / final dropout have p=drop_rate=0.0
    # (module default) -> identity, so they are folded away.


# --------------------------------------------------------------------------
# One-time parameter repack (hoisted out of the per-call wrapper)
# --------------------------------------------------------------------------
def prepare_params(params):
    """Repack torch-layout weights into MXU-friendly slabs. Call once."""
    f32, bf16 = jnp.float32, jnp.bfloat16
    E = params["ln_main_w"].shape[0]
    H = params["ffn_w1"].shape[0]
    W = params["in_proj_weight"].astype(f32)

    # Big (E, 6E + H) bf16 slab, column layout (all offsets multiples of E):
    #   [0,E)=wq  [E,2E)=wk  [2E,3E)=wv  [3E,4E)=wo
    #   [4E,5E)=gate_w1a  [5E,6E)=gate_w1b  [6E,6E+H)=ffn_w1
    w_emat = jnp.concatenate(
        [W[:E].T,
         W[E:2 * E].T,
         W[2 * E:].T,
         params["out_proj_weight"].astype(f32).T,
         params["gate_w1"][:, :E].astype(f32).T,
         params["gate_w1"][:, E:].astype(f32).T,
         params["ffn_w1"].astype(f32).T],
        axis=1).astype(bf16)

    def row(x):
        return jnp.asarray(x, f32).reshape(1, E)

    vecs = jnp.concatenate([
        row(params["ln_main_w"]), row(params["ln_main_b"]),     # 0, 1
        row(params["ln_aux_w"]), row(params["ln_aux_b"]),       # 2, 3
        row(params["in_proj_bias"][:E]),                        # 4  bq
        row(params["in_proj_bias"][E:2 * E]),                   # 5  bk
        row(params["in_proj_bias"][2 * E:]),                    # 6  bv
        row(params["out_proj_bias"]),                           # 7  bo
        row(params["gamma1"]),                                  # 8
        row(params["gate_b1"]),                                 # 9
        row(params["gate_w2"]),                                 # 10
        row(params["ffn_b2"]),                                  # 11
        row(params["gamma2"]),                                  # 12
        jnp.broadcast_to(jnp.asarray(params["gate_b2"], f32).reshape(1, 1),
                         (1, E)),                               # 13 gb2
        jnp.zeros((2, E), f32),                                 # 14, 15 pad
    ], axis=0)                                                  # (16, E) f32

    fb1 = jnp.asarray(params["ffn_b1"], f32).reshape(1, H)
    fw2 = params["ffn_w2"].astype(f32).T.astype(bf16)           # (H, E)
    return dict(w_emat=w_emat, fw2=fw2, vecs=vecs, fb1=fb1)


# --------------------------------------------------------------------------
# pallas_call wrapper
# --------------------------------------------------------------------------
def cross_attention_fusion_forward(main, aux, prepared, *, num_heads=8,
                                   block_q=None):
    """main: (B, Lq, E), aux: (B, S, E) -> (B, Lq, E)."""
    B, L, E = main.shape
    S = aux.shape[1]
    H = prepared["fb1"].shape[-1]
    assert E % num_heads == 0

    if block_q is None:
        # Whole query sequence per step when it fits; otherwise ~128-row tiles.
        block_q = L
        if L > 256:
            for cand in (128, 256, 64, 32, 16, 8):
                if L % cand == 0:
                    block_q = cand
                    break
    assert L % block_q == 0
    nq = L // block_q

    kernel = functools.partial(_caf_kernel, num_heads=num_heads)
    const2 = lambda b, qt: (0, 0)

    return pl.pallas_call(
        kernel,
        out_shape=jax.ShapeDtypeStruct((B, L, E), main.dtype),
        grid_spec=pltpu.PrefetchScalarGridSpec(
            num_scalar_prefetch=0,
            grid=(B, nq),
            in_specs=[
                pl.BlockSpec((None, block_q, E), lambda b, qt: (b, qt, 0)),  # main
                pl.BlockSpec((None, S, E), lambda b, qt: (b, 0, 0)),         # aux
                pl.BlockSpec(prepared["vecs"].shape, const2),   # packed small vectors
                pl.BlockSpec((1, H), const2),                   # ffn_b1
                pl.BlockSpec(prepared["w_emat"].shape, const2),  # packed big weights
                pl.BlockSpec(prepared["fw2"].shape, const2),     # ffn_w2
            ],
            out_specs=pl.BlockSpec((None, block_q, E), lambda b, qt: (b, qt, 0)),
            scratch_shapes=[pltpu.VMEM((S, 2 * E), jnp.bfloat16)],  # cached K|V
        ),
        compiler_params=pltpu.CompilerParams(
            dimension_semantics=("parallel", "arbitrary"),
            vmem_limit_bytes=32 * 1024 * 1024,
        ),
    )(main, aux, prepared["vecs"], prepared["fb1"],
      prepared["w_emat"], prepared["fw2"])


# --------------------------------------------------------------------------
# Pure-JAX reference (mirrors the PyTorch forward) + param init
# --------------------------------------------------------------------------
def _reference(main, aux, params, num_heads):
    E = main.shape[-1]
    hd = E // num_heads

    def ln(x, w, b, eps=1e-5):
        mu = jnp.mean(x, -1, keepdims=True)
        var = jnp.mean((x - mu) ** 2, -1, keepdims=True)
        return (x - mu) / jnp.sqrt(var + eps) * w + b

    def gelu(x):
        return 0.5 * x * (1.0 + lax.erf(x * _INV_SQRT2))

    nm = ln(main, params["ln_main_w"], params["ln_main_b"])
    na = ln(aux, params["ln_aux_w"], params["ln_aux_b"])
    W, bqkv = params["in_proj_weight"], params["in_proj_bias"]
    q = nm @ W[:E].T + bqkv[:E]
    k = na @ W[E:2 * E].T + bqkv[E:2 * E]
    v = na @ W[2 * E:].T + bqkv[2 * E:]
    B, L, _ = q.shape
    S = k.shape[1]
    qh = q.reshape(B, L, num_heads, hd).transpose(0, 2, 1, 3)
    kh = k.reshape(B, S, num_heads, hd).transpose(0, 2, 1, 3)
    vh = v.reshape(B, S, num_heads, hd).transpose(0, 2, 1, 3)
    s = jnp.einsum("bhqd,bhkd->bhqk", qh, kh) / math.sqrt(hd)
    p = jax.nn.softmax(s, axis=-1)
    o = jnp.einsum("bhqk,bhkd->bhqd", p, vh)
    o = o.transpose(0, 2, 1, 3).reshape(B, L, E)
    attn = o @ params["out_proj_weight"].T + params["out_proj_bias"]
    attn_output = main + params["gamma1"] * attn
    gcat = jnp.concatenate([attn_output, main], axis=-1)
    gh = gelu(gcat @ params["gate_w1"].T + params["gate_b1"])
    gate = jax.nn.sigmoid(gh @ params["gate_w2"].T + params["gate_b2"])
    gate_output = gate * attn_output + (1.0 - gate) * main
    ng = ln(gate_output, params["ln_main_w"], params["ln_main_b"])
    f = gelu(ng @ params["ffn_w1"].T + params["ffn_b1"]) @ params["ffn_w2"].T \
        + params["ffn_b2"]
    return gate_output + params["gamma2"] * f


def init_params(key, embed_dim, mlp_ratio=4.0):
    E = embed_dim
    H = int(E * mlp_ratio)
    ks = jax.random.split(key, 12)

    def nrm(k, shape, s=0.05):
        return (s * jax.random.normal(k, shape)).astype(jnp.float32)

    return dict(
        gamma1=1e-4 * jnp.ones((E,), jnp.float32),
        gamma2=1e-4 * jnp.ones((E,), jnp.float32),
        ln_main_w=jnp.ones((E,), jnp.float32),
        ln_main_b=jnp.zeros((E,), jnp.float32),
        ln_aux_w=jnp.ones((E,), jnp.float32),
        ln_aux_b=jnp.zeros((E,), jnp.float32),
        in_proj_weight=nrm(ks[0], (3 * E, E)),
        in_proj_bias=nrm(ks[1], (3 * E,)),
        out_proj_weight=nrm(ks[2], (E, E)),
        out_proj_bias=nrm(ks[3], (E,)),
        gate_w1=nrm(ks[4], (E, 2 * E)),
        gate_b1=nrm(ks[5], (E,)),
        gate_w2=nrm(ks[6], (1, E)),
        gate_b2=nrm(ks[7], (1,)),
        ffn_w1=nrm(ks[8], (H, E)),
        ffn_b1=nrm(ks[9], (H,)),
        ffn_w2=nrm(ks[10], (E, H)),
        ffn_b2=nrm(ks[11], (E,)),
    )


if __name__ == "__main__":
    E, num_heads = 128, 8        # head_dim = 16; hidden = 512
    B, Lq, S = 2, 16, 32
    key = jax.random.PRNGKey(0)
    kp, km, ka = jax.random.split(key, 3)
    params = init_params(kp, E)
    prepared = prepare_params(params)          # one-time weight repack

    main_feature = jax.random.normal(km, (B, Lq, E), jnp.float32)
    aux_feature = jax.random.normal(ka, (B, S, E), jnp.float32)

    out = cross_attention_fusion_forward(main_feature, aux_feature, prepared,
                                         num_heads=num_heads)
    out = jax.block_until_ready(out)

    assert out.shape == (B, Lq, E), out.shape
    assert bool(jnp.all(jnp.isfinite(out)))

    ref = _reference(main_feature, aux_feature, params, num_heads)
    err = float(jnp.max(jnp.abs(out - ref)))
    # bf16 MXU operands + approx reciprocal: residual-scaled error stays tiny
    assert err < 5e-3, f"max abs error {err}"
    print("KERNEL_OK")
</pallas_src>

<mosaic_0001>
module attributes {stable_mosaic.version = 11 : i64} {
  func.func @_caf_kernel(%arg0: i32, %arg1: i32, %arg2: memref<1x16x128xf32, #tpu.memory_space<vmem>>, %arg3: memref<1x32x128xf32, #tpu.memory_space<vmem>>, %arg4: memref<16x128xf32, #tpu.memory_space<vmem>>, %arg5: memref<1x512xf32, #tpu.memory_space<vmem>>, %arg6: memref<128x1280xbf16, #tpu.memory_space<vmem>>, %arg7: memref<512x128xbf16, #tpu.memory_space<vmem>>, %arg8: memref<1x16x128xf32, #tpu.memory_space<vmem>>, %arg9: memref<32x256xbf16, #tpu.memory_space<vmem>>) attributes {dimension_semantics = [#tpu.dimension_semantics<parallel>, #tpu.dimension_semantics<arbitrary>], iteration_bounds = array<i64: 2, 1>, scalar_prefetch = 0 : i64, scratch_operands = 1 : i64, tpu.core_type = #tpu.core_type<tc>, window_params = [{transform_indices = @transform_0, window_bounds = array<i64: 1, 16, 128>}, {transform_indices = @transform_1, window_bounds = array<i64: 1, 32, 128>}, {pipeline_mode = #tpu.pipeline_mode<synchronous>, transform_indices = @transform_2, window_bounds = array<i64: 16, 128>}, {pipeline_mode = #tpu.pipeline_mode<synchronous>, transform_indices = @transform_3, window_bounds = array<i64: 1, 512>}, {pipeline_mode = #tpu.pipeline_mode<synchronous>, transform_indices = @transform_4, window_bounds = array<i64: 128, 1280>}, {pipeline_mode = #tpu.pipeline_mode<synchronous>, transform_indices = @transform_5, window_bounds = array<i64: 512, 128>}, {transform_indices = @transform_6, window_bounds = array<i64: 1, 16, 128>}]} {
    %c0 = arith.constant 0 : index
    %c0_0 = arith.constant 0 : index
    %c0_1 = arith.constant 0 : index
    %0 = vector.load %arg2[%c0, %c0_0, %c0_1] : memref<1x16x128xf32, #tpu.memory_space<vmem>>, vector<1x16x128xf32>
    %1 = vector.shape_cast %0 : vector<1x16x128xf32> to vector<16x128xf32>
    %c0_2 = arith.constant 0 : index
    %c0_3 = arith.constant 0 : index
    %2 = vector.load %arg4[%c0_2, %c0_3] : memref<16x128xf32, #tpu.memory_space<vmem>>, vector<1x128xf32>
    %c1 = arith.constant 1 : index
    %c0_4 = arith.constant 0 : index
    %3 = vector.load %arg4[%c1, %c0_4] : memref<16x128xf32, #tpu.memory_space<vmem>>, vector<1x128xf32>
    %c2 = arith.constant 2 : index
    %c0_5 = arith.constant 0 : index
    %4 = vector.load %arg4[%c2, %c0_5] : memref<16x128xf32, #tpu.memory_space<vmem>>, vector<1x128xf32>
    %c3 = arith.constant 3 : index
    %c0_6 = arith.constant 0 : index
    %5 = vector.load %arg4[%c3, %c0_6] : memref<16x128xf32, #tpu.memory_space<vmem>>, vector<1x128xf32>
    %c4 = arith.constant 4 : index
    %c0_7 = arith.constant 0 : index
    %6 = vector.load %arg4[%c4, %c0_7] : memref<16x128xf32, #tpu.memory_space<vmem>>, vector<1x128xf32>
    %c5 = arith.constant 5 : index
    %c0_8 = arith.constant 0 : index
    %7 = vector.load %arg4[%c5, %c0_8] : memref<16x128xf32, #tpu.memory_space<vmem>>, vector<1x128xf32>
    %c6 = arith.constant 6 : index
    %c0_9 = arith.constant 0 : index
    %8 = vector.load %arg4[%c6, %c0_9] : memref<16x128xf32, #tpu.memory_space<vmem>>, vector<1x128xf32>
    %c7 = arith.constant 7 : index
    %c0_10 = arith.constant 0 : index
    %9 = vector.load %arg4[%c7, %c0_10] : memref<16x128xf32, #tpu.memory_space<vmem>>, vector<1x128xf32>
    %c8 = arith.constant 8 : index
    %c0_11 = arith.constant 0 : index
    %10 = vector.load %arg4[%c8, %c0_11] : memref<16x128xf32, #tpu.memory_space<vmem>>, vector<1x128xf32>
    %c9 = arith.constant 9 : index
    %c0_12 = arith.constant 0 : index
    %11 = vector.load %arg4[%c9, %c0_12] : memref<16x128xf32, #tpu.memory_space<vmem>>, vector<1x128xf32>
    %c10 = arith.constant 10 : index
    %c0_13 = arith.constant 0 : index
    %12 = vector.load %arg4[%c10, %c0_13] : memref<16x128xf32, #tpu.memory_space<vmem>>, vector<1x128xf32>
    %c11 = arith.constant 11 : index
    %c0_14 = arith.constant 0 : index
    %13 = vector.load %arg4[%c11, %c0_14] : memref<16x128xf32, #tpu.memory_space<vmem>>, vector<1x128xf32>
    %c12 = arith.constant 12 : index
    %c0_15 = arith.constant 0 : index
    %14 = vector.load %arg4[%c12, %c0_15] : memref<16x128xf32, #tpu.memory_space<vmem>>, vector<1x128xf32>
    %c13 = arith.constant 13 : index
    %c0_16 = arith.constant 0 : index
    %15 = vector.load %arg4[%c13, %c0_16] : memref<16x128xf32, #tpu.memory_space<vmem>>, vector<1x1xf32>
    %c0_i32 = arith.constant 0 : i32
    %16 = arith.cmpi eq, %arg1, %c0_i32 : i32
    %17 = arith.extui %16 : i1 to i32
    %c0_i32_17 = arith.constant 0 : i32
    %18 = arith.cmpi ne, %17, %c0_i32_17 : i32
    scf.if %18 {
      %c0_105 = arith.constant 0 : index
      %c0_106 = arith.constant 0 : index
      %c0_107 = arith.constant 0 : index
      %300 = vector.load %arg3[%c0_105, %c0_106, %c0_107] : memref<1x32x128xf32, #tpu.memory_space<vmem>>, vector<1x32x128xf32>
      %301 = vector.shape_cast %300 : vector<1x32x128xf32> to vector<32x128xf32>
      %cst_108 = arith.constant dense<0.000000e+00> : vector<32xf32>
      %302 = vector.multi_reduction <add>, %301, %cst_108 [1] : vector<32x128xf32> to vector<32xf32>
      %303 = vector.shape_cast %302 : vector<32xf32> to vector<32x1xf32>
      %cst_109 = arith.constant 1.280000e+02 : f32
      %304 = vector.broadcast %cst_109 : f32 to vector<32x1xf32>
      %305 = arith.divf %303, %304 : vector<32x1xf32>
      %306 = vector.broadcast %305 : vector<32x1xf32> to vector<32x128xf32>
      %307 = arith.subf %301, %306 : vector<32x128xf32>
      %308 = arith.mulf %307, %307 : vector<32x128xf32>
      %cst_110 = arith.constant dense<0.000000e+00> : vector<32xf32>
      %309 = vector.multi_reduction <add>, %308, %cst_110 [1] : vector<32x128xf32> to vector<32xf32>
      %310 = vector.shape_cast %309 : vector<32xf32> to vector<32x1xf32>
      %cst_111 = arith.constant 1.280000e+02 : f32
      %311 = vector.broadcast %cst_111 : f32 to vector<32x1xf32>
      %312 = arith.divf %310, %311 : vector<32x1xf32>
      %cst_112 = arith.constant 9.99999974E-6 : f32
      %313 = vector.broadcast %cst_112 : f32 to vector<32x1xf32>
      %314 = arith.addf %312, %313 : vector<32x1xf32>
      %315 = math.rsqrt %314 : vector<32x1xf32>
      %316 = vector.broadcast %315 : vector<32x1xf32> to vector<32x128xf32>
      %317 = arith.mulf %307, %316 : vector<32x128xf32>
      %318 = vector.broadcast %4 : vector<1x128xf32> to vector<32x128xf32>
      %319 = arith.mulf %317, %318 : vector<32x128xf32>
      %320 = vector.broadcast %5 : vector<1x128xf32> to vector<32x128xf32>
      %321 = arith.addf %319, %320 : vector<32x128xf32>
      %322 = arith.truncf %321 : vector<32x128xf32> to vector<32x128xbf16>
      %c0_113 = arith.constant 0 : index
      %c128 = arith.constant 128 : index
      %323 = vector.load %arg6[%c0_113, %c128] : memref<128x1280xbf16, #tpu.memory_space<vmem>>, vector<128x256xbf16>
      %cst_114 = arith.constant dense<0.000000e+00> : vector<32x256xf32>
      %324 = tpu.matmul %322, %323, %cst_114 {dimension_numbers = #tpu.dot_dimension_numbers<[1], [0], [0], [1], [0, 0, 1, 1], [], []>} : vector<32x128xbf16>, vector<128x256xbf16>, vector<32x256xf32> -> vector<32x256xf32>
      %325 = tpu.concatenate %7, %8 in 1 : vector<1x128xf32>, vector<1x128xf32> -> vector<1x256xf32>
      %326 = vector.broadcast %325 : vector<1x256xf32> to vector<32x256xf32>
      %327 = arith.addf %324, %326 : vector<32x256xf32>
      %328 = arith.truncf %327 : vector<32x256xf32> to vector<32x256xbf16>
      %c0_115 = arith.constant 0 : index
      %c0_116 = arith.constant 0 : index
      %329 = vector.load %arg9[%c0_115, %c0_116] : memref<32x256xbf16, #tpu.memory_space<vmem>>, vector<32x256xbf16>
      tpu.vector_store %arg9[%c0_115, %c0_116], %328 {strides = array<i32>} : memref<32x256xbf16, #tpu.memory_space<vmem>>, vector<32x256xbf16>,
    } else {
    }
    %c0_18 = arith.constant 0 : index
    %c0_19 = arith.constant 0 : index
    %19 = vector.load %arg9[%c0_18, %c0_19] : memref<32x256xbf16, #tpu.memory_space<vmem>>, vector<32x256xbf16>
    %cst = arith.constant dense<0.000000e+00> : vector<16xf32>
    %20 = vector.multi_reduction <add>, %1, %cst [1] : vector<16x128xf32> to vector<16xf32>
    %21 = vector.shape_cast %20 : vector<16xf32> to vector<16x1xf32>
    %cst_20 = arith.constant 1.280000e+02 : f32
    %22 = vector.broadcast %cst_20 : f32 to vector<16x1xf32>
    %23 = arith.divf %21, %22 : vector<16x1xf32>
    %24 = vector.broadcast %23 : vector<16x1xf32> to vector<16x128xf32>
    %25 = arith.subf %1, %24 : vector<16x128xf32>
    %26 = arith.mulf %25, %25 : vector<16x128xf32>
    %cst_21 = arith.constant dense<0.000000e+00> : vector<16xf32>
    %27 = vector.multi_reduction <add>, %26, %cst_21 [1] : vector<16x128xf32> to vector<16xf32>
    %28 = vector.shape_cast %27 : vector<16xf32> to vector<16x1xf32>
    %cst_22 = arith.constant 1.280000e+02 : f32
    %29 = vector.broadcast %cst_22 : f32 to vector<16x1xf32>
    %30 = arith.divf %28, %29 : vector<16x1xf32>
    %cst_23 = arith.constant 9.99999974E-6 : f32
    %31 = vector.broadcast %cst_23 : f32 to vector<16x1xf32>
    %32 = arith.addf %30, %31 : vector<16x1xf32>
    %33 = math.rsqrt %32 : vector<16x1xf32>
    %34 = vector.broadcast %33 : vector<16x1xf32> to vector<16x128xf32>
    %35 = arith.mulf %25, %34 : vector<16x128xf32>
    %36 = vector.broadcast %2 : vector<1x128xf32> to vector<16x128xf32>
    %37 = arith.mulf %35, %36 : vector<16x128xf32>
    %38 = vector.broadcast %3 : vector<1x128xf32> to vector<16x128xf32>
    %39 = arith.addf %37, %38 : vector<16x128xf32>
    %40 = arith.truncf %39 : vector<16x128xf32> to vector<16x128xbf16>
    %c0_24 = arith.constant 0 : index
    %c0_25 = arith.constant 0 : index
    %41 = vector.load %arg6[%c0_24, %c0_25] : memref<128x1280xbf16, #tpu.memory_space<vmem>>, vector<128x128xbf16>
    %cst_26 = arith.constant dense<0.000000e+00> : vector<16x128xf32>
    %42 = tpu.matmul %40, %41, %cst_26 {dimension_numbers = #tpu.dot_dimension_numbers<[1], [0], [0], [1], [0, 0, 1, 1], [], []>} : vector<16x128xbf16>, vector<128x128xbf16>, vector<16x128xf32> -> vector<16x128xf32>
    %43 = vector.broadcast %6 : vector<1x128xf32> to vector<16x128xf32>
    %44 = arith.addf %42, %43 : vector<16x128xf32>
    %cst_27 = arith.constant 2.500000e-01 : f32
    %45 = vector.broadcast %cst_27 : f32 to vector<16x128xf32>
    %46 = arith.mulf %44, %45 : vector<16x128xf32>
    %47 = vector.extract_strided_slice %46 {offsets = [0, 0], sizes = [16, 16], strides = [1, 1]} : vector<16x128xf32> to vector<16x16xf32>
    %48 = arith.truncf %47 : vector<16x16xf32> to vector<16x16xbf16>
    %49 = vector.extract_strided_slice %19 {offsets = [0, 0], sizes = [32, 16], strides = [1, 1]} : vector<32x256xbf16> to vector<32x16xbf16>
    %50 = vector.extract_strided_slice %19 {offsets = [0, 128], sizes = [32, 16], strides = [1, 1]} : vector<32x256xbf16> to vector<32x16xbf16>
    %cst_28 = arith.constant dense<0.000000e+00> : vector<16x32xf32>
    %51 = tpu.matmul %48, %49, %cst_28 {dimension_numbers = #tpu.dot_dimension_numbers<[1], [1], [0], [0], [0, 0, 1, 0], [], []>} : vector<16x16xbf16>, vector<32x16xbf16>, vector<16x32xf32> -> vector<16x32xf32>
    %cst_29 = arith.constant dense<0xFF800000> : vector<16xf32>
    %52 = vector.multi_reduction <maximumf>, %51, %cst_29 [1] : vector<16x32xf32> to vector<16xf32>
    %53 = vector.shape_cast %52 : vector<16xf32> to vector<16x1xf32>
    %54 = vector.broadcast %53 : vector<16x1xf32> to vector<16x32xf32>
    %55 = arith.subf %51, %54 : vector<16x32xf32>
    %56 = math.exp %55 : vector<16x32xf32>
    %cst_30 = arith.constant dense<0.000000e+00> : vector<16xf32>
    %57 = vector.multi_reduction <add>, %56, %cst_30 [1] : vector<16x32xf32> to vector<16xf32>
    %58 = vector.shape_cast %57 : vector<16xf32> to vector<16x1xf32>
    %59 = tpu.reciprocal %58 {approx = true} : vector<16x1xf32> -> vector<16x1xf32>
    %60 = vector.broadcast %59 : vector<16x1xf32> to vector<16x32xf32>
    %61 = arith.mulf %56, %60 : vector<16x32xf32>
    %62 = arith.truncf %61 : vector<16x32xf32> to vector<16x32xbf16>
    %cst_31 = arith.constant dense<0.000000e+00> : vector<16x16xf32>
    %63 = tpu.matmul %62, %50, %cst_31 {dimension_numbers = #tpu.dot_dimension_numbers<[1], [0], [0], [1], [0, 0, 1, 1], [], []>} : vector<16x32xbf16>, vector<32x16xbf16>, vector<16x16xf32> -> vector<16x16xf32>
    %c0_32 = arith.constant 0 : index
    %c384 = arith.constant 384 : index
    %64 = vector.load %arg6[%c0_32, %c384] : memref<128x1280xbf16, #tpu.memory_space<vmem>>, vector<16x128xbf16>
    %65 = arith.truncf %63 : vector<16x16xf32> to vector<16x16xbf16>
    %cst_33 = arith.constant dense<0.000000e+00> : vector<16x128xf32>
    %66 = tpu.matmul %65, %64, %cst_33 {dimension_numbers = #tpu.dot_dimension_numbers<[1], [0], [0], [1], [0, 0, 1, 1], [], []>} : vector<16x16xbf16>, vector<16x128xbf16>, vector<16x128xf32> -> vector<16x128xf32>
    %67 = vector.extract_strided_slice %46 {offsets = [0, 16], sizes = [16, 16], strides = [1, 1]} : vector<16x128xf32> to vector<16x16xf32>
    %68 = arith.truncf %67 : vector<16x16xf32> to vector<16x16xbf16>
    %69 = vector.extract_strided_slice %19 {offsets = [0, 16], sizes = [32, 16], strides = [1, 1]} : vector<32x256xbf16> to vector<32x16xbf16>
    %70 = vector.extract_strided_slice %19 {offsets = [0, 144], sizes = [32, 16], strides = [1, 1]} : vector<32x256xbf16> to vector<32x16xbf16>
    %cst_34 = arith.constant dense<0.000000e+00> : vector<16x32xf32>
    %71 = tpu.matmul %68, %69, %cst_34 {dimension_numbers = #tpu.dot_dimension_numbers<[1], [1], [0], [0], [0, 0, 1, 0], [], []>} : vector<16x16xbf16>, vector<32x16xbf16>, vector<16x32xf32> -> vector<16x32xf32>
    %cst_35 = arith.constant dense<0xFF800000> : vector<16xf32>
    %72 = vector.multi_reduction <maximumf>, %71, %cst_35 [1] : vector<16x32xf32> to vector<16xf32>
    %73 = vector.shape_cast %72 : vector<16xf32> to vector<16x1xf32>
    %74 = vector.broadcast %73 : vector<16x1xf32> to vector<16x32xf32>
    %75 = arith.subf %71, %74 : vector<16x32xf32>
    %76 = math.exp %75 : vector<16x32xf32>
    %cst_36 = arith.constant dense<0.000000e+00> : vector<16xf32>
    %77 = vector.multi_reduction <add>, %76, %cst_36 [1] : vector<16x32xf32> to vector<16xf32>
    %78 = vector.shape_cast %77 : vector<16xf32> to vector<16x1xf32>
    %79 = tpu.reciprocal %78 {approx = true} : vector<16x1xf32> -> vector<16x1xf32>
    %80 = vector.broadcast %79 : vector<16x1xf32> to vector<16x32xf32>
    %81 = arith.mulf %76, %80 : vector<16x32xf32>
    %82 = arith.truncf %81 : vector<16x32xf32> to vector<16x32xbf16>
    %cst_37 = arith.constant dense<0.000000e+00> : vector<16x16xf32>
    %83 = tpu.matmul %82, %70, %cst_37 {dimension_numbers = #tpu.dot_dimension_numbers<[1], [0], [0], [1], [0, 0, 1, 1], [], []>} : vector<16x32xbf16>, vector<32x16xbf16>, vector<16x16xf32> -> vector<16x16xf32>
    %c16 = arith.constant 16 : index
    %c384_38 = arith.constant 384 : index
    %84 = vector.load %arg6[%c16, %c384_38] : memref<128x1280xbf16, #tpu.memory_space<vmem>>, vector<16x128xbf16>
    %85 = arith.truncf %83 : vector<16x16xf32> to vector<16x16xbf16>
    %cst_39 = arith.constant dense<0.000000e+00> : vector<16x128xf32>
    %86 = tpu.matmul %85, %84, %cst_39 {dimension_numbers = #tpu.dot_dimension_numbers<[1], [0], [0], [1], [0, 0, 1, 1], [], []>} : vector<16x16xbf16>, vector<16x128xbf16>, vector<16x128xf32> -> vector<16x128xf32>
    %87 = arith.addf %66, %86 : vector<16x128xf32>
    %88 = vector.extract_strided_slice %46 {offsets = [0, 32], sizes = [16, 16], strides = [1, 1]} : vector<16x128xf32> to vector<16x16xf32>
    %89 = arith.truncf %88 : vector<16x16xf32> to vector<16x16xbf16>
    %90 = vector.extract_strided_slice %19 {offsets = [0, 32], sizes = [32, 16], strides = [1, 1]} : vector<32x256xbf16> to vector<32x16xbf16>
    %91 = vector.extract_strided_slice %19 {offsets = [0, 160], sizes = [32, 16], strides = [1, 1]} : vector<32x256xbf16> to vector<32x16xbf16>
    %cst_40 = arith.constant dense<0.000000e+00> : vector<16x32xf32>
    %92 = tpu.matmul %89, %90, %cst_40 {dimension_numbers = #tpu.dot_dimension_numbers<[1], [1], [0], [0], [0, 0, 1, 0], [], []>} : vector<16x16xbf16>, vector<32x16xbf16>, vector<16x32xf32> -> vector<16x32xf32>
    %cst_41 = arith.constant dense<0xFF800000> : vector<16xf32>
    %93 = vector.multi_reduction <maximumf>, %92, %cst_41 [1] : vector<16x32xf32> to vector<16xf32>
    %94 = vector.shape_cast %93 : vector<16xf32> to vector<16x1xf32>
    %95 = vector.broadcast %94 : vector<16x1xf32> to vector<16x32xf32>
    %96 = arith.subf %92, %95 : vector<16x32xf32>
    %97 = math.exp %96 : vector<16x32xf32>
    %cst_42 = arith.constant dense<0.000000e+00> : vector<16xf32>
    %98 = vector.multi_reduction <add>, %97, %cst_42 [1] : vector<16x32xf32> to vector<16xf32>
    %99 = vector.shape_cast %98 : vector<16xf32> to vector<16x1xf32>
    %100 = tpu.reciprocal %99 {approx = true} : vector<16x1xf32> -> vector<16x1xf32>
    %101 = vector.broadcast %100 : vector<16x1xf32> to vector<16x32xf32>
    %102 = arith.mulf %97, %101 : vector<16x32xf32>
    %103 = arith.truncf %102 : vector<16x32xf32> to vector<16x32xbf16>
    %cst_43 = arith.constant dense<0.000000e+00> : vector<16x16xf32>
    %104 = tpu.matmul %103, %91, %cst_43 {dimension_numbers = #tpu.dot_dimension_numbers<[1], [0], [0], [1], [0, 0, 1, 1], [], []>} : vector<16x32xbf16>, vector<32x16xbf16>, vector<16x16xf32> -> vector<16x16xf32>
    %c32 = arith.constant 32 : index
    %c384_44 = arith.constant 384 : index
    %105 = vector.load %arg6[%c32, %c384_44] : memref<128x1280xbf16, #tpu.memory_space<vmem>>, vector<16x128xbf16>
    %106 = arith.truncf %104 : vector<16x16xf32> to vector<16x16xbf16>
    %cst_45 = arith.constant dense<0.000000e+00> : vector<16x128xf32>
    %107 = tpu.matmul %106, %105, %cst_45 {dimension_numbers = #tpu.dot_dimension_numbers<[1], [0], [0], [1], [0, 0, 1, 1], [], []>} : vector<16x16xbf16>, vector<16x128xbf16>, vector<16x128xf32> -> vector<16x128xf32>
    %108 = arith.addf %87, %107 : vector<16x128xf32>
    %109 = vector.extract_strided_slice %46 {offsets = [0, 48], sizes = [16, 16], strides = [1, 1]} : vector<16x128xf32> to vector<16x16xf32>
    %110 = arith.truncf %109 : vector<16x16xf32> to vector<16x16xbf16>
    %111 = vector.extract_strided_slice %19 {offsets = [0, 48], sizes = [32, 16], strides = [1, 1]} : vector<32x256xbf16> to vector<32x16xbf16>
    %112 = vector.extract_strided_slice %19 {offsets = [0, 176], sizes = [32, 16], strides = [1, 1]} : vector<32x256xbf16> to vector<32x16xbf16>
    %cst_46 = arith.constant dense<0.000000e+00> : vector<16x32xf32>
    %113 = tpu.matmul %110, %111, %cst_46 {dimension_numbers = #tpu.dot_dimension_numbers<[1], [1], [0], [0], [0, 0, 1, 0], [], []>} : vector<16x16xbf16>, vector<32x16xbf16>, vector<16x32xf32> -> vector<16x32xf32>
    %cst_47 = arith.constant dense<0xFF800000> : vector<16xf32>
    %114 = vector.multi_reduction <maximumf>, %113, %cst_47 [1] : vector<16x32xf32> to vector<16xf32>
    %115 = vector.shape_cast %114 : vector<16xf32> to vector<16x1xf32>
    %116 = vector.broadcast %115 : vector<16x1xf32> to vector<16x32xf32>
    %117 = arith.subf %113, %116 : vector<16x32xf32>
    %118 = math.exp %117 : vector<16x32xf32>
    %cst_48 = arith.constant dense<0.000000e+00> : vector<16xf32>
    %119 = vector.multi_reduction <add>, %118, %cst_48 [1] : vector<16x32xf32> to vector<16xf32>
    %120 = vector.shape_cast %119 : vector<16xf32> to vector<16x1xf32>
    %121 = tpu.reciprocal %120 {approx = true} : vector<16x1xf32> -> vector<16x1xf32>
    %122 = vector.broadcast %121 : vector<16x1xf32> to vector<16x32xf32>
    %123 = arith.mulf %118, %122 : vector<16x32xf32>
    %124 = arith.truncf %123 : vector<16x32xf32> to vector<16x32xbf16>
    %cst_49 = arith.constant dense<0.000000e+00> : vector<16x16xf32>
    %125 = tpu.matmul %124, %112, %cst_49 {dimension_numbers = #tpu.dot_dimension_numbers<[1], [0], [0], [1], [0, 0, 1, 1], [], []>} : vector<16x32xbf16>, vector<32x16xbf16>, vector<16x16xf32> -> vector<16x16xf32>
    %c48 = arith.constant 48 : index
    %c384_50 = arith.constant 384 : index
    %126 = vector.load %arg6[%c48, %c384_50] : memref<128x1280xbf16, #tpu.memory_space<vmem>>, vector<16x128xbf16>
    %127 = arith.truncf %125 : vector<16x16xf32> to vector<16x16xbf16>
    %cst_51 = arith.constant dense<0.000000e+00> : vector<16x128xf32>
    %128 = tpu.matmul %127, %126, %cst_51 {dimension_numbers = #tpu.dot_dimension_numbers<[1], [0], [0], [1], [0, 0, 1, 1], [], []>} : vector<16x16xbf16>, vector<16x128xbf16>, vector<16x128xf32> -> vector<16x128xf32>
    %129 = arith.addf %108, %128 : vector<16x128xf32>
    %130 = vector.extract_strided_slice %46 {offsets = [0, 64], sizes = [16, 16], strides = [1, 1]} : vector<16x128xf32> to vector<16x16xf32>
    %131 = arith.truncf %130 : vector<16x16xf32> to vector<16x16xbf16>
    %132 = vector.extract_strided_slice %19 {offsets = [0, 64], sizes = [32, 16], strides = [1, 1]} : vector<32x256xbf16> to vector<32x16xbf16>
    %133 = vector.extract_strided_slice %19 {offsets = [0, 192], sizes = [32, 16], strides = [1, 1]} : vector<32x256xbf16> to vector<32x16xbf16>
    %cst_52 = arith.constant dense<0.000000e+00> : vector<16x32xf32>
    %134 = tpu.matmul %131, %132, %cst_52 {dimension_numbers = #tpu.dot_dimension_numbers<[1], [1], [0], [0], [0, 0, 1, 0], [], []>} : vector<16x16xbf16>, vector<32x16xbf16>, vector<16x32xf32> -> vector<16x32xf32>
    %cst_53 = arith.constant dense<0xFF800000> : vector<16xf32>
    %135 = vector.multi_reduction <maximumf>, %134, %cst_53 [1] : vector<16x32xf32> to vector<16xf32>
    %136 = vector.shape_cast %135 : vector<16xf32> to vector<16x1xf32>
    %137 = vector.broadcast %136 : vector<16x1xf32> to vector<16x32xf32>
    %138 = arith.subf %134, %137 : vector<16x32xf32>
    %139 = math.exp %138 : vector<16x32xf32>
    %cst_54 = arith.constant dense<0.000000e+00> : vector<16xf32>
    %140 = vector.multi_reduction <add>, %139, %cst_54 [1] : vector<16x32xf32> to vector<16xf32>
    %141 = vector.shape_cast %140 : vector<16xf32> to vector<16x1xf32>
    %142 = tpu.reciprocal %141 {approx = true} : vector<16x1xf32> -> vector<16x1xf32>
    %143 = vector.broadcast %142 : vector<16x1xf32> to vector<16x32xf32>
    %144 = arith.mulf %139, %143 : vector<16x32xf32>
    %145 = arith.truncf %144 : vector<16x32xf32> to vector<16x32xbf16>
    %cst_55 = arith.constant dense<0.000000e+00> : vector<16x16xf32>
    %146 = tpu.matmul %145, %133, %cst_55 {dimension_numbers = #tpu.dot_dimension_numbers<[1], [0], [0], [1], [0, 0, 1, 1], [], []>} : vector<16x32xbf16>, vector<32x16xbf16>, vector<16x16xf32> -> vector<16x16xf32>
    %c64 = arith.constant 64 : index
    %c384_56 = arith.constant 384 : index
    %147 = vector.load %arg6[%c64, %c384_56] : memref<128x1280xbf16, #tpu.memory_space<vmem>>, vector<16x128xbf16>
    %148 = arith.truncf %146 : vector<16x16xf32> to vector<16x16xbf16>
    %cst_57 = arith.constant dense<0.000000e+00> : vector<16x128xf32>
    %149 = tpu.matmul %148, %147, %cst_57 {dimension_numbers = #tpu.dot_dimension_numbers<[1], [0], [0], [1], [0, 0, 1, 1], [], []>} : vector<16x16xbf16>, vector<16x128xbf16>, vector<16x128xf32> -> vector<16x128xf32>
    %150 = arith.addf %129, %149 : vector<16x128xf32>
    %151 = vector.extract_strided_slice %46 {offsets = [0, 80], sizes = [16, 16], strides = [1, 1]} : vector<16x128xf32> to vector<16x16xf32>
    %152 = arith.truncf %151 : vector<16x16xf32> to vector<16x16xbf16>
    %153 = vector.extract_strided_slice %19 {offsets = [0, 80], sizes = [32, 16], strides = [1, 1]} : vector<32x256xbf16> to vector<32x16xbf16>
    %154 = vector.extract_strided_slice %19 {offsets = [0, 208], sizes = [32, 16], strides = [1, 1]} : vector<32x256xbf16> to vector<32x16xbf16>
    %cst_58 = arith.constant dense<0.000000e+00> : vector<16x32xf32>
    %155 = tpu.matmul %152, %153, %cst_58 {dimension_numbers = #tpu.dot_dimension_numbers<[1], [1], [0], [0], [0, 0, 1, 0], [], []>} : vector<16x16xbf16>, vector<32x16xbf16>, vector<16x32xf32> -> vector<16x32xf32>
    %cst_59 = arith.constant dense<0xFF800000> : vector<16xf32>
    %156 = vector.multi_reduction <maximumf>, %155, %cst_59 [1] : vector<16x32xf32> to vector<16xf32>
    %157 = vector.shape_cast %156 : vector<16xf32> to vector<16x1xf32>
    %158 = vector.broadcast %157 : vector<16x1xf32> to vector<16x32xf32>
    %159 = arith.subf %155, %158 : vector<16x32xf32>
    %160 = math.exp %159 : vector<16x32xf32>
    %cst_60 = arith.constant dense<0.000000e+00> : vector<16xf32>
    %161 = vector.multi_reduction <add>, %160, %cst_60 [1] : vector<16x32xf32> to vector<16xf32>
    %162 = vector.shape_cast %161 : vector<16xf32> to vector<16x1xf32>
    %163 = tpu.reciprocal %162 {approx = true} : vector<16x1xf32> -> vector<16x1xf32>
    %164 = vector.broadcast %163 : vector<16x1xf32> to vector<16x32xf32>
    %165 = arith.mulf %160, %164 : vector<16x32xf32>
    %166 = arith.truncf %165 : vector<16x32xf32> to vector<16x32xbf16>
    %cst_61 = arith.constant dense<0.000000e+00> : vector<16x16xf32>
    %167 = tpu.matmul %166, %154, %cst_61 {dimension_numbers = #tpu.dot_dimension_numbers<[1], [0], [0], [1], [0, 0, 1, 1], [], []>} : vector<16x32xbf16>, vector<32x16xbf16>, vector<16x16xf32> -> vector<16x16xf32>
    %c80 = arith.constant 80 : index
    %c384_62 = arith.constant 384 : index
    %168 = vector.load %arg6[%c80, %c384_62] : memref<128x1280xbf16, #tpu.memory_space<vmem>>, vector<16x128xbf16>
    %169 = arith.truncf %167 : vector<16x16xf32> to vector<16x16xbf16>
    %cst_63 = arith.constant dense<0.000000e+00> : vector<16x128xf32>
    %170 = tpu.matmul %169, %168, %cst_63 {dimension_numbers = #tpu.dot_dimension_numbers<[1], [0], [0], [1], [0, 0, 1, 1], [], []>} : vector<16x16xbf16>, vector<16x128xbf16>, vector<16x128xf32> -> vector<16x128xf32>
    %171 = arith.addf %150, %170 : vector<16x128xf32>
    %172 = vector.extract_strided_slice %46 {offsets = [0, 96], sizes = [16, 16], strides = [1, 1]} : vector<16x128xf32> to vector<16x16xf32>
    %173 = arith.truncf %172 : vector<16x16xf32> to vector<16x16xbf16>
    %174 = vector.extract_strided_slice %19 {offsets = [0, 96], sizes = [32, 16], strides = [1, 1]} : vector<32x256xbf16> to vector<32x16xbf16>
    %175 = vector.extract_strided_slice %19 {offsets = [0, 224], sizes = [32, 16], strides = [1, 1]} : vector<32x256xbf16> to vector<32x16xbf16>
    %cst_64 = arith.constant dense<0.000000e+00> : vector<16x32xf32>
    %176 = tpu.matmul %173, %174, %cst_64 {dimension_numbers = #tpu.dot_dimension_numbers<[1], [1], [0], [0], [0, 0, 1, 0], [], []>} : vector<16x16xbf16>, vector<32x16xbf16>, vector<16x32xf32> -> vector<16x32xf32>
    %cst_65 = arith.constant dense<0xFF800000> : vector<16xf32>
    %177 = vector.multi_reduction <maximumf>, %176, %cst_65 [1] : vector<16x32xf32> to vector<16xf32>
    %178 = vector.shape_cast %177 : vector<16xf32> to vector<16x1xf32>
    %179 = vector.broadcast %178 : vector<16x1xf32> to vector<16x32xf32>
    %180 = arith.subf %176, %179 : vector<16x32xf32>
    %181 = math.exp %180 : vector<16x32xf32>
    %cst_66 = arith.constant dense<0.000000e+00> : vector<16xf32>
    %182 = vector.multi_reduction <add>, %181, %cst_66 [1] : vector<16x32xf32> to vector<16xf32>
    %183 = vector.shape_cast %182 : vector<16xf32> to vector<16x1xf32>
    %184 = tpu.reciprocal %183 {approx = true} : vector<16x1xf32> -> vector<16x1xf32>
    %185 = vector.broadcast %184 : vector<16x1xf32> to vector<16x32xf32>
    %186 = arith.mulf %181, %185 : vector<16x32xf32>
    %187 = arith.truncf %186 : vector<16x32xf32> to vector<16x32xbf16>
    %cst_67 = arith.constant dense<0.000000e+00> : vector<16x16xf32>
    %188 = tpu.matmul %187, %175, %cst_67 {dimension_numbers = #tpu.dot_dimension_numbers<[1], [0], [0], [1], [0, 0, 1, 1], [], []>} : vector<16x32xbf16>, vector<32x16xbf16>, vector<16x16xf32> -> vector<16x16xf32>
    %c96 = arith.constant 96 : index
    %c384_68 = arith.constant 384 : index
    %189 = vector.load %arg6[%c96, %c384_68] : memref<128x1280xbf16, #tpu.memory_space<vmem>>, vector<16x128xbf16>
    %190 = arith.truncf %188 : vector<16x16xf32> to vector<16x16xbf16>
    %cst_69 = arith.constant dense<0.000000e+00> : vector<16x128xf32>
    %191 = tpu.matmul %190, %189, %cst_69 {dimension_numbers = #tpu.dot_dimension_numbers<[1], [0], [0], [1], [0, 0, 1, 1], [], []>} : vector<16x16xbf16>, vector<16x128xbf16>, vector<16x128xf32> -> vector<16x128xf32>
    %192 = arith.addf %171, %191 : vector<16x128xf32>
    %193 = vector.extract_strided_slice %46 {offsets = [0, 112], sizes = [16, 16], strides = [1, 1]} : vector<16x128xf32> to vector<16x16xf32>
    %194 = arith.truncf %193 : vector<16x16xf32> to vector<16x16xbf16>
    %195 = vector.extract_strided_slice %19 {offsets = [0, 112], sizes = [32, 16], strides = [1, 1]} : vector<32x256xbf16> to vector<32x16xbf16>
    %196 = vector.extract_strided_slice %19 {offsets = [0, 240], sizes = [32, 16], strides = [1, 1]} : vector<32x256xbf16> to vector<32x16xbf16>
    %cst_70 = arith.constant dense<0.000000e+00> : vector<16x32xf32>
    %197 = tpu.matmul %194, %195, %cst_70 {dimension_numbers = #tpu.dot_dimension_numbers<[1], [1], [0], [0], [0, 0, 1, 0], [], []>} : vector<16x16xbf16>, vector<32x16xbf16>, vector<16x32xf32> -> vector<16x32xf32>
    %cst_71 = arith.constant dense<0xFF800000> : vector<16xf32>
    %198 = vector.multi_reduction <maximumf>, %197, %cst_71 [1] : vector<16x32xf32> to vector<16xf32>
    %199 = vector.shape_cast %198 : vector<16xf32> to vector<16x1xf32>
    %200 = vector.broadcast %199 : vector<16x1xf32> to vector<16x32xf32>
    %201 = arith.subf %197, %200 : vector<16x32xf32>
    %202 = math.exp %201 : vector<16x32xf32>
    %cst_72 = arith.constant dense<0.000000e+00> : vector<16xf32>
    %203 = vector.multi_reduction <add>, %202, %cst_72 [1] : vector<16x32xf32> to vector<16xf32>
    %204 = vector.shape_cast %203 : vector<16xf32> to vector<16x1xf32>
    %205 = tpu.reciprocal %204 {approx = true} : vector<16x1xf32> -> vector<16x1xf32>
    %206 = vector.broadcast %205 : vector<16x1xf32> to vector<16x32xf32>
    %207 = arith.mulf %202, %206 : vector<16x32xf32>
    %208 = arith.truncf %207 : vector<16x32xf32> to vector<16x32xbf16>
    %cst_73 = arith.constant dense<0.000000e+00> : vector<16x16xf32>
    %209 = tpu.matmul %208, %196, %cst_73 {dimension_numbers = #tpu.dot_dimension_numbers<[1], [0], [0], [1], [0, 0, 1, 1], [], []>} : vector<16x32xbf16>, vector<32x16xbf16>, vector<16x16xf32> -> vector<16x16xf32>
    %c112 = arith.constant 112 : index
    %c384_74 = arith.constant 384 : index
    %210 = vector.load %arg6[%c112, %c384_74] : memref<128x1280xbf16, #tpu.memory_space<vmem>>, vector<16x128xbf16>
    %211 = arith.truncf %209 : vector<16x16xf32> to vector<16x16xbf16>
    %cst_75 = arith.constant dense<0.000000e+00> : vector<16x128xf32>
    %212 = tpu.matmul %211, %210, %cst_75 {dimension_numbers = #tpu.dot_dimension_numbers<[1], [0], [0], [1], [0, 0, 1, 1], [], []>} : vector<16x16xbf16>, vector<16x128xbf16>, vector<16x128xf32> -> vector<16x128xf32>
    %213 = arith.addf %192, %212 : vector<16x128xf32>
    %214 = vector.broadcast %9 : vector<1x128xf32> to vector<16x128xf32>
    %215 = arith.addf %213, %214 : vector<16x128xf32>
    %216 = vector.broadcast %10 : vector<1x128xf32> to vector<16x128xf32>
    %217 = arith.mulf %216, %215 : vector<16x128xf32>
    %218 = arith.addf %1, %217 : vector<16x128xf32>
    %219 = arith.truncf %218 : vector<16x128xf32> to vector<16x128xbf16>
    %c0_76 = arith.constant 0 : index
    %c512 = arith.constant 512 : index
    %220 = vector.load %arg6[%c0_76, %c512] : memref<128x1280xbf16, #tpu.memory_space<vmem>>, vector<128x128xbf16>
    %cst_77 = arith.constant dense<0.000000e+00> : vector<16x128xf32>
    %221 = tpu.matmul %219, %220, %cst_77 {dimension_numbers = #tpu.dot_dimension_numbers<[1], [0], [0], [1], [0, 0, 1, 1], [], []>} : vector<16x128xbf16>, vector<128x128xbf16>, vector<16x128xf32> -> vector<16x128xf32>
    %222 = arith.truncf %1 : vector<16x128xf32> to vector<16x128xbf16>
    %c0_78 = arith.constant 0 : index
    %c640 = arith.constant 640 : index
    %223 = vector.load %arg6[%c0_78, %c640] : memref<128x1280xbf16, #tpu.memory_space<vmem>>, vector<128x128xbf16>
    %cst_79 = arith.constant dense<0.000000e+00> : vector<16x128xf32>
    %224 = tpu.matmul %222, %223, %cst_79 {dimension_numbers = #tpu.dot_dimension_numbers<[1], [0], [0], [1], [0, 0, 1, 1], [], []>} : vector<16x128xbf16>, vector<128x128xbf16>, vector<16x128xf32> -> vector<16x128xf32>
    %225 = arith.addf %221, %224 : vector<16x128xf32>
    %226 = vector.broadcast %11 : vector<1x128xf32> to vector<16x128xf32>
    %227 = arith.addf %225, %226 : vector<16x128xf32>
    %cst_80 = arith.constant 5.000000e-01 : f32
    %228 = vector.broadcast %cst_80 : f32 to vector<16x128xf32>
    %229 = arith.mulf %228, %227 : vector<16x128xf32>
    %cst_81 = arith.constant 0.707106769 : f32
    %230 = vector.broadcast %cst_81 : f32 to vector<16x128xf32>
    %231 = arith.mulf %227, %230 : vector<16x128xf32>
    %232 = math.erf %231 : vector<16x128xf32>
    %cst_82 = arith.constant 1.000000e+00 : f32
    %233 = vector.broadcast %cst_82 : f32 to vector<16x128xf32>
    %234 = arith.addf %233, %232 : vector<16x128xf32>
    %235 = arith.mulf %229, %234 : vector<16x128xf32>
    %236 = vector.broadcast %12 : vector<1x128xf32> to vector<16x128xf32>
    %237 = arith.mulf %235, %236 : vector<16x128xf32>
    %cst_83 = arith.constant dense<0.000000e+00> : vector<16xf32>
    %238 = vector.multi_reduction <add>, %237, %cst_83 [1] : vector<16x128xf32> to vector<16xf32>
    %239 = vector.shape_cast %238 : vector<16xf32> to vector<16x1xf32>
    %240 = vector.broadcast %15 : vector<1x1xf32> to vector<16x1xf32>
    %241 = arith.addf %239, %240 : vector<16x1xf32>
    %cst_84 = arith.constant 0.000000e+00 : f32
    %242 = vector.broadcast %cst_84 : f32 to vector<16x1xf32>
    %243 = arith.subf %242, %241 : vector<16x1xf32>
    %244 = math.exp %243 : vector<16x1xf32>
    %cst_85 = arith.constant 1.000000e+00 : f32
    %245 = vector.broadcast %cst_85 : f32 to vector<16x1xf32>
    %246 = arith.addf %245, %244 : vector<16x1xf32>
    %247 = tpu.reciprocal %246 {approx = true} : vector<16x1xf32> -> vector<16x1xf32>
    %248 = vector.broadcast %247 : vector<16x1xf32> to vector<16x128xf32>
    %249 = arith.mulf %248, %218 : vector<16x128xf32>
    %cst_86 = arith.constant 1.000000e+00 : f32
    %250 = vector.broadcast %cst_86 : f32 to vector<16x1xf32>
    %251 = arith.subf %250, %247 : vector<16x1xf32>
    %252 = vector.broadcast %251 : vector<16x1xf32> to vector<16x128xf32>
    %253 = arith.mulf %252, %1 : vector<16x128xf32>
    %254 = arith.addf %249, %253 : vector<16x128xf32>
    %cst_87 = arith.constant dense<0.000000e+00> : vector<16xf32>
    %255 = vector.multi_reduction <add>, %254, %cst_87 [1] : vector<16x128xf32> to vector<16xf32>
    %256 = vector.shape_cast %255 : vector<16xf32> to vector<16x1xf32>
    %cst_88 = arith.constant 1.280000e+02 : f32
    %257 = vector.broadcast %cst_88 : f32 to vector<16x1xf32>
    %258 = arith.divf %256, %257 : vector<16x1xf32>
    %259 = vector.broadcast %258 : vector<16x1xf32> to vector<16x128xf32>
    %260 = arith.subf %254, %259 : vector<16x128xf32>
    %261 = arith.mulf %260, %260 : vector<16x128xf32>
    %cst_89 = arith.constant dense<0.000000e+00> : vector<16xf32>
    %262 = vector.multi_reduction <add>, %261, %cst_89 [1] : vector<16x128xf32> to vector<16xf32>
    %263 = vector.shape_cast %262 : vector<16xf32> to vector<16x1xf32>
    %cst_90 = arith.constant 1.280000e+02 : f32
    %264 = vector.broadcast %cst_90 : f32 to vector<16x1xf32>
    %265 = arith.divf %263, %264 : vector<16x1xf32>
    %cst_91 = arith.constant 9.99999974E-6 : f32
    %266 = vector.broadcast %cst_91 : f32 to vector<16x1xf32>
    %267 = arith.addf %265, %266 : vector<16x1xf32>
    %268 = math.rsqrt %267 : vector<16x1xf32>
    %269 = vector.broadcast %268 : vector<16x1xf32> to vector<16x128xf32>
    %270 = arith.mulf %260, %269 : vector<16x128xf32>
    %271 = vector.broadcast %2 : vector<1x128xf32> to vector<16x128xf32>
    %272 = arith.mulf %270, %271 : vector<16x128xf32>
    %273 = vector.broadcast %3 : vector<1x128xf32> to vector<16x128xf32>
    %274 = arith.addf %272, %273 : vector<16x128xf32>
    %275 = arith.truncf %274 : vector<16x128xf32> to vector<16x128xbf16>
    %c0_92 = arith.constant 0 : index
    %c768 = arith.constant 768 : index
    %276 = vector.load %arg6[%c0_92, %c768] : memref<128x1280xbf16, #tpu.memory_space<vmem>>, vector<128x512xbf16>
    %cst_93 = arith.constant dense<0.000000e+00> : vector<16x512xf32>
    %277 = tpu.matmul %275, %276, %cst_93 {dimension_numbers = #tpu.dot_dimension_numbers<[1], [0], [0], [1], [0, 0, 1, 1], [], []>} : vector<16x128xbf16>, vector<128x512xbf16>, vector<16x512xf32> -> vector<16x512xf32>
    %c0_94 = arith.constant 0 : index
    %c0_95 = arith.constant 0 : index
    %278 = vector.load %arg5[%c0_94, %c0_95] : memref<1x512xf32, #tpu.memory_space<vmem>>, vector<1x512xf32>
    %279 = vector.broadcast %278 : vector<1x512xf32> to vector<16x512xf32>
    %280 = arith.addf %277, %279 : vector<16x512xf32>
    %cst_96 = arith.constant 5.000000e-01 : f32
    %281 = vector.broadcast %cst_96 : f32 to vector<16x512xf32>
    %282 = arith.mulf %281, %280 : vector<16x512xf32>
    %cst_97 = arith.constant 0.707106769 : f32
    %283 = vector.broadcast %cst_97 : f32 to vector<16x512xf32>
    %284 = arith.mulf %280, %283 : vector<16x512xf32>
    %285 = math.erf %284 : vector<16x512xf32>
    %cst_98 = arith.constant 1.000000e+00 : f32
    %286 = vector.broadcast %cst_98 : f32 to vector<16x512xf32>
    %287 = arith.addf %286, %285 : vector<16x512xf32>
    %288 = arith.mulf %282, %287 : vector<16x512xf32>
    %289 = arith.truncf %288 : vector<16x512xf32> to vector<16x512xbf16>
    %c0_99 = arith.constant 0 : index
    %c0_100 = arith.constant 0 : index
    %290 = vector.load %arg7[%c0_99, %c0_100] : memref<512x128xbf16, #tpu.memory_space<vmem>>, vector<512x128xbf16>
    %cst_101 = arith.constant dense<0.000000e+00> : vector<16x128xf32>
    %291 = tpu.matmul %289, %290, %cst_101 {dimension_numbers = #tpu.dot_dimension_numbers<[1], [0], [0], [1], [0, 0, 1, 1], [], []>} : vector<16x512xbf16>, vector<512x128xbf16>, vector<16x128xf32> -> vector<16x128xf32>
    %292 = vector.broadcast %13 : vector<1x128xf32> to vector<16x128xf32>
    %293 = arith.addf %291, %292 : vector<16x128xf32>
    %294 = vector.broadcast %14 : vector<1x128xf32> to vector<16x128xf32>
    %295 = arith.mulf %294, %293 : vector<16x128xf32>
    %296 = arith.addf %254, %295 : vector<16x128xf32>
    %c0_102 = arith.constant 0 : index
    %c0_103 = arith.constant 0 : index
    %c0_104 = arith.constant 0 : index
    %297 = vector.load %arg8[%c0_102, %c0_103, %c0_104] : memref<1x16x128xf32, #tpu.memory_space<vmem>>, vector<1x16x128xf32>
    %298 = vector.shape_cast %297 : vector<1x16x128xf32> to vector<16x128xf32>
    %299 = vector.shape_cast %296 : vector<16x128xf32> to vector<1x16x128xf32>
    tpu.vector_store %arg8[%c0_102, %c0_103, %c0_104], %299 {strides = array<i32>} : memref<1x16x128xf32, #tpu.memory_space<vmem>>, vector<1x16x128xf32>,
    return
  }
  func.func @transform_0(%arg0: i32, %arg1: i32) -> (i32, i32, i32) {
    %c0_i32 = arith.constant 0 : i32
    %c0_i32_0 = arith.constant 0 : i32
    return %arg0, %arg1, %c0_i32 : i32, i32, i32
  }
  func.func @transform_1(%arg0: i32, %arg1: i32) -> (i32, i32, i32) {
    %c0_i32 = arith.constant 0 : i32
    %c0_i32_0 = arith.constant 0 : i32
    %c0_i32_1 = arith.constant 0 : i32
    return %arg0, %c0_i32, %c0_i32_0 : i32, i32, i32
  }
  func.func @transform_2(%arg0: i32, %arg1: i32) -> (i32, i32) {
    %c0_i32 = arith.constant 0 : i32
    %c0_i32_0 = arith.constant 0 : i32
    %c0_i32_1 = arith.constant 0 : i32
    return %c0_i32, %c0_i32_0 : i32, i32
  }
  func.func @transform_3(%arg0: i32, %arg1: i32) -> (i32, i32) {
    %c0_i32 = arith.constant 0 : i32
    %c0_i32_0 = arith.constant 0 : i32
    %c0_i32_1 = arith.constant 0 : i32
    return %c0_i32, %c0_i32_0 : i32, i32
  }
  func.func @transform_4(%arg0: i32, %arg1: i32) -> (i32, i32) {
    %c0_i32 = arith.constant 0 : i32
    %c0_i32_0 = arith.constant 0 : i32
    %c0_i32_1 = arith.constant 0 : i32
    return %c0_i32, %c0_i32_0 : i32, i32
  }
  func.func @transform_5(%arg0: i32, %arg1: i32) -> (i32, i32) {
    %c0_i32 = arith.constant 0 : i32
    %c0_i32_0 = arith.constant 0 : i32
    %c0_i32_1 = arith.constant 0 : i32
    return %c0_i32, %c0_i32_0 : i32, i32
  }
  func.func @transform_6(%arg0: i32, %arg1: i32) -> (i32, i32, i32) {
    %c0_i32 = arith.constant 0 : i32
    %c0_i32_0 = arith.constant 0 : i32
    return %arg0, %arg1, %c0_i32 : i32, i32, i32
  }
}

</mosaic_0001>

<bundles_post_ra>
// kernel: tpu_custom_call.1
= control target key start
LH: loop header
LB: loop body
LE: loop exit
PB: predicated region body
PF: predicated region fallthrough
CT: control target
= control target key end

     0   :  { %s5301_s0 = inlined_call_operand.hbm [shape: f32[2,16,128], index: 0, kind: input, shape index: {}]   ;;  %s5302_s1 = inlined_call_operand.hbm [shape: f32[2,32,128], index: 1, kind: input, shape index: {}]   ;;  %s5303_s2 = inlined_call_operand.hbm [shape: f32[16,128], index: 2, kind: input, shape index: {}]   ;;  %s5304_s3 = inlined_call_operand.vmem [shape: f32[1,512], index: 3, kind: input, shape index: {}]   ;;  %s5305_s4 = inlined_call_operand.hbm [shape: bf16[128,1280], index: 4, kind: input, shape index: {}]   ;;  %s5306_s5 = inlined_call_operand.hbm [shape: bf16[512,128], index: 5, kind: input, shape index: {}]   ;;  %s5307_s6 = inlined_call_operand.hbm [shape: f32[2,16,128], index: 6, kind: output, shape index: {}]  }
   0x1   :  { %5316 = sst [smem:[#allocation22_spill]] %s5301_s0 }
   0x2   :  { %5317 = sst [smem:[#allocation23_spill]] %s5303_s2 }
   0x3   :  { %5318 = sst [smem:[#allocation24_spill]] %s5305_s4 }
   0x4   :  { %5319 = sst [smem:[#allocation25_spill]] %s5306_s5 }
   0x5   :  { %11 = vsyncpa [#allocation4], 0 }
   0x6   :  { %13 = vsyncpa [#allocation4 + $0x1], 0 }
   0x7   :  { %14 = vsyncpa [#allocation7], 0 }
   0x8   :  { %16 = vsyncpa [#allocation7 + $0x1], 0 }
   0x9   :  { %17 = vsyncpa [#allocation10], 0 }
   0xa   :  { %18 = vsyncpa [#allocation5], 0 }
   0xb   :  { %20 = vsyncpa [#allocation5 + $0x1], 0  ;;  %s4666_s21 = smov 0   ;;  %s4668_s22 = smov 0  }
   0xc   :  { %s4670_s23 = smov 0   ;;  %s4672_s24 = smov 0  }
   0xd   :  { %s4674_s25 = smov 0   ;;  %s4676_s26 = smov 0  }
   0xe LB: > { %5320 = sst [smem:[#allocation18_spill]] %s4593_s23  ;;  %s4697_s27 = sadd.s32 4294967295, %s4605_s26   ;;  %s4605_s26 = sphi %s4676_s26, %s26_s26   ;;  %s4601_s25 = sphi %s4674_s25, %s5344_s25   ;;  %s4597_s24 = sphi %s4672_s24, %s5343_s24   ;;  %s4593_s23 = sphi %s4670_s23, %s5339_s23   ;;  %s4589_s22 = sphi %s4668_s22, %s5342_s22   ;;  %s4585_s21 = sphi %s4666_s21, %s5341_s21  }
   0xf   : > { %5321 = sst [smem:[#allocation19_spill]] %s4605_s26  ;;  %s3449_s28 = sadd.s32 4294967294, %s4605_s26  }
  0x10   : > { %p60_p0 = scmp.ne.s32.totalorder %s4589_s22, %s4585_s21  ;;  %p61_p1 = scmp.eq.s32.totalorder %s4697_s27, 0 }
  0x11   : > { %p196_p2 = scmp.eq.s32.totalorder %s4697_s27, 1  ;;  %p202_p3 = scmp.eq.s32.totalorder %s3449_s28, 1 }
  0x12   : > { %p4706_p4 = por %p61_p1, %p60_p0  ;;  %p3450_p5 = scmp.ge.s32.totalorder %s4605_s26, 1 }
  0x13   : > { %p4711_p6 = por %p202_p3, %p60_p0  ;;  %p209_p7 = scmp.lt.s32.totalorder %s4605_s26, 3 }
  0x14   : > { %s4607_s8 = smov [#allocation8]   ;;  %s4608_s11 = smov [#allocation9]  }
  0x15   : > { %p4716_p8 = pnand %p3450_p5, %p209_p7  ;;  %s221_s9 = sshll.u32 %s4607_s8, 4  ;;  %s222_s9 = int_to_ptr.vmem [resolvable:$true] %s221_s9 }
  0x16   : > { %s237_s12 = sshll.u32 %s4608_s11, 4  ;;  %s4390_s13 = scalar_lea.vmem %s222_s9, 256  ;;  %s238_s12 = int_to_ptr.vmem [resolvable:$true] %s237_s12 }
  0x17   : > { %p4031_p9 = pneg %p4716_p8  ;;  %p4391_p13 = scmp.ne.s32.totalorder %s222_s9, %s4390_s13 }
  0x18   : > { %p4398_p5 = scmp.lt.s32.totalorder %s222_s9, %s222_s9  ;;  %p4399_p7 = scmp.lt.s32.totalorder %s4390_s13, %s4390_s13 }
  0x19   : > { %p4725_p11 = pnand %p4031_p9, %p61_p1 }
  0x1a   : > { %p4400_p10 = por %p4399_p7, %p4398_p5 }
  0x1b   : > { %p4381_p12 = pneg %p4725_p11 }
  0x1d   : > { %p4393_p0 = pnand %p4391_p13, %p4381_p12 }
  0x1f   : > { %p4394_p3 = pneg %p4393_p0 }
  0x21   : > { %p4401_p9 = pnand %p4400_p10, %p4394_p3 }
  0x23   : > { %4404 = shalt.err (!%p4401_p9)
}
  0x24   : > { %s5308_s14 = smov 128   ;;  %s5310_s15 = smov 8  }
  0x25   : > { %s5326_s2 = sld [smem:[#allocation23_spill]]  ;;  %s4416_s18 = scalar_lea.vmem %s238_s12, 10240 }
  0x26   : > { %p4417_p13 = scmp.ne.s32.totalorder %s238_s12, %s4416_s18  ;;  %p4424_p10 = scmp.lt.s32.totalorder %s238_s12, %s238_s12 }
  0x27   : > { %p4425_p3 = scmp.lt.s32.totalorder %s4416_s18, %s4416_s18 }
  0x28   : > { %p4419_p0 = pnand %p4417_p13, %p4381_p12 }
  0x29   : > { %p4426_p7 = por %p4425_p3, %p4424_p10 }
  0x2a   : > { %p4420_p5 = pneg %p4419_p0 }
  0x2b   : > { %4034 = dma.hbm_to_vmem [thread:$0]  (!%p4725_p11), %s5326_s2, 256, %s222_s9, [#allocation7], %s5308_s14, %s5308_s14, %s5310_s15  }
  0x2c   : > { %p4427_p9 = pnand %p4426_p7, %p4420_p5 }
  0x2e   : > { %4430 = shalt.err (!%p4427_p9)
}
  0x2f   : > { %s4611_s19 = smov 640   ;;  %s4612_s20 = smov 40  }
  0x30   : > { %s5327_s4 = sld [smem:[#allocation24_spill]]  ;;  %s4613_s9 = smov [#allocation11]  }
  0x31   : > { %s250_s11 = sshll.u32 %s4613_s9, 4  ;;  %s251_s11 = int_to_ptr.vmem [resolvable:$true] %s250_s11 }
  0x32   : > { %s4442_s13 = scalar_lea.vmem %s251_s11, 4096  ;;  %p4450_p5 = scmp.lt.s32.totalorder %s251_s11, %s251_s11 }
  0x33   : > { %p4443_p13 = scmp.ne.s32.totalorder %s251_s11, %s4442_s13  ;;  %p4451_p3 = scmp.lt.s32.totalorder %s4442_s13, %s4442_s13 }
  0x35   : > { %p4445_p0 = pnand %p4443_p13, %p4381_p12  ;;  %p4452_p7 = por %p4451_p3, %p4450_p5 }
  0x36   : > { %4037 = dma.hbm_to_vmem [thread:$0]  (!%p4725_p11), %s5327_s4, 10240, %s238_s12, [#allocation10], %s4611_s19, %s4611_s19, %s4612_s20  }
  0x37   : > { %p4446_p10 = pneg %p4445_p0 }
  0x39   : > { %p4453_p9 = pnand %p4452_p7, %p4446_p10 }
  0x3b   : > { %4456 = shalt.err (!%p4453_p9)
}
  0x3c   : > { %s4614_s16 = smov 64   ;;  %s4615_s12 = smov 4  }
  0x3d   : > { %s5328_s5 = sld [smem:[#allocation25_spill]]  ;;  %s47_s19 = sadd.s32 1, %s4593_s23 }
  0x3e   : > { %s38_s20 = sadd.s32 1, %s4601_s25  ;;  %p54_p12 = scmp.ne.s32.totalorder %s4593_s23, %s4589_s22 }
  0x3f   : > { %p40_p13 = scmp.ge.s32.totalorder %s38_s20, 2  ;;  %p55_p0 = scmp.eq.s32.totalorder %s4605_s26, 0 }
  0x40   : > { %p4765_p10 = por %p196_p2, %p54_p12  ;;  %p4055_p5 = scmp.lt.s32.totalorder %s4605_s26, 2 }
  0x41   : > { %s5346_s20 = smov (%p40_p13, %s38_s20), 0  ;;  %p56_p3 = por %p55_p0, %p54_p12 }
  0x42   : > { %5330 = sst [smem:[#allocation20_spill]] %s5346_s20  ;;  %s4773_s10 = sand.u32 1, %s4593_s23  }
  0x43   : > { %4040 = dma.hbm_to_vmem [thread:$0]  (!%p4725_p11), %s5328_s5, 4096, %s251_s11, [#allocation10], %s4614_s16, %s4614_s16, %s4615_s12  }
  0x44   : > { %s42_s8 = ssub.s32 %s4601_s25, %s5346_s20  ;;  %s3455_s9 = sshll.u32 %s4773_s10, 4 }
  0x45   : > { %p45_p11 = scmp.eq.s32.totalorder %s42_s8, 0  ;;  %s3631_s11 = sshll.u32 %s4601_s25, 8 }
  0x46   : > { %s5332_s0 = sld [smem:[#allocation22_spill]]  ;;  %s268_s18 = scalar_lea.vmem [#allocation3], %s3455_s9 }
  0x47   : > { %s4780_s13 = scalar_select %p45_p11, %s4593_s23, %s47_s19  }
  0x48   : > { %s277_s14 = sshll.u32 %s268_s18, 4  ;;  %p4787_p2 = pnand %p4055_p5, %p56_p3  ;;  %s278_s14 = int_to_ptr.vmem [resolvable:$true] %s277_s14 }
  0x49   : > { %5331 = sst [smem:[#allocation21_spill]] %s4780_s13  ;;  %s287_s2 = sand.u32 1, %s4605_s26  }
  0x4a   : > { %s3458_s8 = sshll.u32 %s4773_s10, 5  ;;  %s265_s4 = scalar_lea.sflag [#allocation4], %s4773_s10 }
  0x4b   : > { %p4459_p7 = pneg %p4787_p2  ;;  %s4470_s19 = scalar_lea.vmem %s278_s14, 256 }
  0x4c   : > { %s276_s17 = scalar_lea.hbm %s5332_s0, %s3631_s11  ;;  %p4471_p9 = scmp.ne.s32.totalorder %s278_s14, %s4470_s19 }
  0x4d   : > { %s4616_s9 = smov [#allocation3]  }
  0x4e   : > { %p4473_p12 = pnand %p4471_p9, %p4459_p7  ;;  %s4475_s11 = sshll.u32 %s4616_s9, 4  ;;  %s4476_s11 = int_to_ptr.vmem [resolvable:$false] %s4475_s11 }
  0x4f   : > { %s4477_s16 = scalar_lea.vmem %s4476_s11, 512  ;;  %p4478_p0 = scmp.lt.s32.totalorder %s278_s14, %s4476_s11 }
  0x50   : > { %p4474_p13 = pneg %p4473_p12  ;;  %p4479_p5 = scmp.lt.s32.totalorder %s4477_s16, %s4470_s19 }
  0x52   : > { %p4480_p3 = por %p4479_p5, %p4478_p0 }
  0x54   : > { %p4481_p11 = pnand %p4480_p3, %p4474_p13 }
  0x56   : > { %4484 = shalt.err (!%p4481_p11)
}
  0x57   : > { %s5334_s10 = smov 8   ;;  %s5335_s12 = smov 128  }
  0x58   : > { %4044 = dma.hbm_to_vmem [thread:$0]  (!%p4787_p2), %s276_s17, 256, %s278_s14, %s265_s4, %s5335_s12, %s5335_s12, %s5334_s10  }
  0x59   : > { %s3632_s18 = sshll.u32 %s4601_s25, 9  ;;  %s291_s20 = scalar_lea.vmem [#allocation6], %s3458_s8 }
  0x5a   : > { %s297_s9 = scalar_lea.hbm %s5302_s1, %s3632_s18  ;;  %s298_s13 = sshll.u32 %s291_s20, 4  ;;  %s299_s13 = int_to_ptr.vmem [resolvable:$true] %s298_s13 }
  0x5b   : > { %s288_s19 = scalar_lea.sflag [#allocation7], %s287_s2  ;;  %s4498_s11 = scalar_lea.vmem %s299_s13, 512 }
  0x5c   : > { %p4499_p9 = scmp.ne.s32.totalorder %s299_s13, %s4498_s11  ;;  %s4617_s16 = smov [#allocation6]  }
  0x5d   : > { %s4503_s23 = sshll.u32 %s4617_s16, 4  ;;  %s4504_s23 = int_to_ptr.vmem [resolvable:$false] %s4503_s23 }
  0x5e   : > { %p4501_p12 = pnand %p4499_p9, %p4459_p7  ;;  %s4505_s26 = scalar_lea.vmem %s4504_s23, 1024 }
  0x5f   : > { %p4506_p0 = scmp.lt.s32.totalorder %s299_s13, %s4504_s23  ;;  %p4507_p5 = scmp.lt.s32.totalorder %s4505_s26, %s4498_s11 }
  0x60   : > { %p4502_p13 = pneg %p4501_p12 }
  0x61   : > { %p4508_p3 = por %p4507_p5, %p4506_p0 }
  0x63   : > { %p4509_p11 = pnand %p4508_p3, %p4502_p13 }
  0x65   : > { %4512 = shalt.err (!%p4509_p11)
}
  0x66   : > { %4047 = dma.hbm_to_vmem [thread:$0]  (!%p4787_p2), %s297_s9, 512, %s299_s13, %s288_s19, %s5335_s12, %s5335_s12, %s5334_s10  }
  0x67   : > { %310 = sbr.rel (%p4716_p8) target bundleno = 5324 (0x14cc), region = 44  ;;  %s4819_s0 = sand.u32 (!%p4716_p8), 1, %s4589_s22  }
  0x68   : > { %s3462_s2 = sshll.u32 (!%p4716_p8), %s4819_s0, 4  ;;  %s313_s4 = scalar_lea.sflag (!%p4716_p8), [#allocation4], %s4819_s0 }
  0x69   : > { %s4825_s5 = scalar_lea.vmem (!%p4716_p8), [#allocation3], %s3462_s2 }
  0x6c   : > { %4564 = dma.done.wait (%p4706_p4), %s313_s4, 256  }
  0x6d   : > { %4566 = vsyncadd (%p4706_p4), %s313_s4, 4294967040  ;;  %s321_s23 = sand.u32 1, %s4697_s27   ;;  %s3463_s26 = sshll.u32 %s4819_s0, 5 }
  0x6e   : > { %s322_s7 = scalar_lea.sflag [#allocation7], %s321_s23  ;;  %s325_s14 = scalar_lea.vmem [#allocation6], %s3463_s26 }
  0x6f   : > { %4568 = dma.done.wait (%p4706_p4), %s322_s7, 512  }
  0x70   : > { %4570 = vsyncadd (%p4706_p4), %s322_s7, 4294966784 }
  0x71   : > { %4572 = dma.done.wait (%p61_p1), [#allocation7], 256  }
  0x72   : > { %4574 = vsyncadd (%p61_p1), [#allocation7], 4294967040 }
  0x73   : > { %4576 = dma.done.wait (%p61_p1), [#allocation10], 14336  }
  0x74   : > { %4578 = vsyncadd (%p61_p1), [#allocation10], 4294952960  ;;  %v394_v0 = vld [vmem:[%s325_s14] sm:$0xff]  ;;  %v396_v1 = vld [vmem:[%s325_s14 + $0x10] sm:$0xff]  ;;  %v4618_v37 = vmov 0.0   ;;  %v4619_v51 = vmov 0  }
  0x75   : > { %398 = vadd.xlane.f32.xlu0 %v394_v0  ;;  %402 = vadd.xlane.f32.xlu1 %v396_v1  ;;  %v395_v2 = vld [vmem:[%s325_s14 + $0x8] sm:$0xff]  ;;  %v397_v3 = vld [vmem:[%s325_s14 + $0x18] sm:$0xff]  ;;  %v374_v4 = vld [vmem:[%s4825_s5] sm:$0xff]  ;;  %vm4620_vm0 = vmmov 0   ;;  %vm808_vm1 = vcmask 130048   ;;  %vm859_vm2 = vcmask 261120  }
  0x76   : > { %v375_v5 = vld [vmem:[%s4825_s5 + $0x8] sm:$0xff]  ;;  %3777 = vmatprep.subr.bf16.mxu1 %v4618_v37  ;;  %597 = vmatprep.mubr.bf16.mxu0 %v4619_v51  ;;  %s4621_s27 = smov 112   ;;  %s4622_s29 = smov 96  }
  0x77   : > { %v4131_v6 = vld [vmem:[#allocation9 + $0x238] ss:$40 sps:$4 sm:$0xff]   ;;  %v4133_v7 = vld [vmem:[#allocation9 + $0x234] ss:$40 sps:$4 sm:$0xff]   ;;  %v4134_v32 = vld [vmem:[#allocation9 + $0x1e8] ss:$40 sps:$4 sm:$0xff]   ;;  %4129 = vset.pattern.permute.xlu1 %v4619_v51  ;;  %4130 = vset.pattern.permute.xlu0 %v4619_v51 }
  0x78   : > { %565 = vmatprep.subr.bf16.mxu0 %v4131_v6  ;;  %v4136_v33 = vld [vmem:[#allocation9 + $0x1e4] ss:$40 sps:$4 sm:$0xff]   ;;  %v4137_v34 = vld [vmem:[#allocation9 + $0x198] ss:$40 sps:$4 sm:$0xff]   ;;  %v4139_v35 = vld [vmem:[#allocation9 + $0x194] ss:$40 sps:$4 sm:$0xff]   ;;  %3793 = vmatprep.mubr.msk.bf16.mxu1 %vm4620_vm0, %v4618_v37 }
  0x79   : > { %400 = vadd.xlane.f32.xlu0 %v395_v2  ;;  %404 = vadd.xlane.f32.xlu1 %v397_v3  ;;  %v4140_v36 = vld [vmem:[#allocation9 + $0x230] ss:$40 sps:$4 sm:$0xff]   ;;  %v4143_v39 = vld [vmem:[#allocation9 + $0x144] ss:$40 sps:$4 sm:$0xff]   ;;  %v4144_v40 = vld [vmem:[#allocation9 + $0x1e0] ss:$40 sps:$4 sm:$0xff]  }
  0x7a   : > { %566 = vmatpush1.bf16.msra.mxu0 %v4133_v7  ;;  %3778 = vmatpush3.bf16.msra.mxu1 %v4140_v36  ;;  %v4141_v38 = vld [vmem:[#allocation9 + $0x148] ss:$40 sps:$4 sm:$0xff]   ;;  %v4145_v41 = vld [vmem:[#allocation9 + $0xf8] ss:$40 sps:$4 sm:$0xff]   ;;  %v4147_v42 = vld [vmem:[#allocation9 + $0xf4] ss:$40 sps:$4 sm:$0xff]  }
  0x7b   : > { %567 = vmatprep.subr.bf16.mxu0 %v4134_v32  ;;  %3779 = vmatprep.subr.bf16.mxu1 %v4618_v37  ;;  %v4148_v43 = vld [vmem:[#allocation9 + $0x190] ss:$40 sps:$4 sm:$0xff]   ;;  %v4151_v45 = vld [vmem:[#allocation9 + $0xa4] ss:$40 sps:$4 sm:$0xff]   ;;  %v4152_v46 = vld [vmem:[#allocation9 + $0x140] ss:$40 sps:$4 sm:$0xff]  }
  0x7c   : > { %v4149_v44 = vld [vmem:[#allocation9 + $0xa8] ss:$40 sps:$4 sm:$0xff]   ;;  %v4153_v47 = vld [vmem:[#allocation9 + $0x58] ss:$40 sps:$4 sm:$0xff]   ;;  %v4155_v48 = vld [vmem:[#allocation9 + $0x54] ss:$40 sps:$4 sm:$0xff]  }
  0x7d   : > { %650 = vadd.xlane.f32.xlu0 %v374_v4  ;;  %652 = vadd.xlane.f32.xlu1 %v375_v5  ;;  %v4156_v49 = vld [vmem:[#allocation9 + $0xf0] ss:$40 sps:$4 sm:$0xff]   ;;  %v4159_v52 = vld [vmem:[#allocation9 + $0x4] ss:$40 sps:$4 sm:$0xff]   ;;  %v4160_v53 = vld [vmem:[#allocation9 + $0xa0] ss:$40 sps:$4 sm:$0xff]  }
  0x7e   : > { %568 = vmatpush1.bf16.msra.mxu0 %v4136_v33  ;;  %3780 = vmatpush3.bf16.msra.mxu1 %v4144_v40  ;;  %v4157_v50 = vld [vmem:[#allocation9 + $0x8] ss:$40 sps:$4 sm:$0xff]   ;;  %s4623_s15 = smov 80   ;;  %s4624_s20 = smov 64  }
  0x7f   : > { %569 = vmatprep.subr.bf16.mxu0 %v4137_v34  ;;  %3781 = vmatprep.subr.bf16.mxu1 %v4618_v37  ;;  %v4161_v54 = vld [vmem:[#allocation9 + $0x50] ss:$40 sps:$4 sm:$0xff]   ;;  %v4162_v55 = vld [vmem:[#allocation9] ss:$40 sps:$4 sm:$0xff]   ;;  %s4625_s13 = smov 48   ;;  %s4626_s17 = smov 32  }
  0x80   : > { %s4627_s8 = smov 16   ;;  %s370_s18 = scalar_lea.vmem [#allocation12], %s3462_s2 }
  0x81   : > { %s3310_s9 = sshll.u32 %s370_s18, 4  ;;  %s3637_s19 = sshll.u32 %s4597_s24, 8  ;;  %s5252_s9 = int_to_ptr.vmem [resolvable:$true] %s3310_s9 }
  0x82   : > { %570 = vmatpush1.bf16.msra.mxu0 %v4139_v35  ;;  %3782 = vmatpush3.bf16.msra.mxu1 %v4148_v43  ;;  %s5250_s4 = scalar_lea.hbm %s5307_s6, %s3637_s19  ;;  %s4513_s2 = scalar_lea.vmem %s5252_s9, 256 }
  0x83   : > { %571 = vmatprep.subr.bf16.mxu0 %v4141_v38  ;;  %3783 = vmatprep.subr.bf16.mxu1 %v4618_v37  ;;  %v3493_v38 = vld [vmem:[#allocation8 + $0x1] ss:$0 sm:$0xff]  ;;  %p4514_p1 = scmp.ne.s32.totalorder %s5252_s9, %s4513_s2  ;;  %s4628_s24 = smov [#allocation12]  }
  0x84   : > { %s4517_s23 = sshll.u32 %s4628_s24, 4  ;;  %s4518_s23 = int_to_ptr.vmem [resolvable:$false] %s4517_s23 }
  0x85   : > { %p4515_p4 = pnand %p4514_p1, %p4765_p10  ;;  %s4519_s26 = scalar_lea.vmem %s4518_s23, 512 }
  0x86   : > { %572 = vmatpush1.bf16.msra.mxu0 %v4143_v39  ;;  %3784 = vmatpush3.bf16.msra.mxu1 %v4152_v46  ;;  %p4520_p2 = scmp.lt.s32.totalorder %s5252_s9, %s4518_s23  ;;  %p4521_p7 = scmp.lt.s32.totalorder %s4519_s26, %s4513_s2 }
  0x87   : > { %573 = vmatprep.subr.bf16.mxu0 %v4145_v41  ;;  %3785 = vmatprep.subr.bf16.mxu1 %v4618_v37  ;;  %p4516_p8 = pneg %p4515_p4 }
  0x88   : > { %p4522_p9 = por %p4521_p7, %p4520_p2 }
  0x8a   : > { %574 = vmatpush1.bf16.msra.mxu0 %v4147_v42  ;;  %3786 = vmatpush3.bf16.msra.mxu1 %v4156_v49  ;;  %p4523_p12 = pnand %p4522_p9, %p4516_p8 }
  0x8b   : > { %575 = vmatprep.subr.bf16.mxu0 %v4149_v44  ;;  %3787 = vmatprep.subr.bf16.mxu1 %v4618_v37 }
  0x8e   : > { %576 = vmatpush1.bf16.msra.mxu0 %v4151_v45  ;;  %3788 = vmatpush3.bf16.msra.mxu1 %v4160_v53 }
  0x8f   : > { %577 = vmatprep.subr.bf16.mxu0 %v4153_v47  ;;  %3789 = vmatprep.subr.bf16.mxu1 %v4618_v37 }
  0x92   : > { %578 = vmatpush1.bf16.msra.mxu0 %v4155_v48  ;;  %3790 = vmatpush3.bf16.msra.mxu1 %v4161_v54 }
  0x93   : > { %579 = vmatprep.subr.bf16.mxu0 %v4157_v50  ;;  %3791 = vmatprep.subr.bf16.mxu1 %v4618_v37  ;;  %v3470_v50 = vld [vmem:[#allocation8 + $0x5] ss:$0 sm:$0xff] }
  0x96   : > { %580 = vmatpush1.bf16.msra.mxu0 %v4159_v52  ;;  %3792 = vmatpush3.bf16.msra.mxu1 %v4162_v55 }
  0x97   : > { %3797 = vmatprep.subr.bf16.mxu0 %v4618_v37  ;;  %3805 = vmatprep.subr.bf16.mxu1 %v4618_v37 }
  0xfe   : > { %v399_v8 = vpop.xlane.xlu0 %398  ;;  %v403_v9 = vpop.xlane.xlu1 %402 }
  0xff   : > { %v407_v10 = vmul.f32 0.0078125, %v399_v8  ;;  %v409_v11 = vmul.f32 0.0078125, %v403_v9 }
 0x101   : > { %v4847_v12 = vsub.f32 %v394_v0, %v407_v10  ;;  %v4849_v13 = vsub.f32 %v396_v1, %v409_v11 }
 0x102   : > { %v401_v14 = vpop.xlane.xlu0 %400  ;;  %v405_v15 = vpop.xlane.xlu1 %404 }
 0x103   : > { %v408_v16 = vmul.f32 0.0078125, %v401_v14  ;;  %v415_v17 = vmul.f32 %v4847_v12, %v4847_v12  ;;  %v410_v18 = vmul.f32 0.0078125, %v405_v15  ;;  %v417_v21 = vmul.f32 %v4849_v13, %v4849_v13  ;;  %v3468_v14 = vld [vmem:[#allocation8 + $0x2] ss:$0 sm:$0xff] }
 0x105   : > { %v4853_v19 = vsub.f32 %v395_v2, %v408_v16  ;;  %419 = vadd.xlane.f32.xlu0 %v415_v17  ;;  %v4855_v20 = vsub.f32 %v397_v3, %v410_v18 }
 0x106   : > { %v651_v22 = vpop.xlane.xlu0 %650  ;;  %v653_v23 = vpop.xlane.xlu1 %652 }
 0x107   : > { %v655_v24 = vmul.f32 0.0078125, %v651_v22  ;;  %v416_v25 = vmul.f32 %v4853_v19, %v4853_v19  ;;  %v656_v26 = vmul.f32 0.0078125, %v653_v23  ;;  %v418_v29 = vmul.f32 %v4855_v20, %v4855_v20 }
 0x109   : > { %v4861_v27 = vsub.f32 %v374_v4, %v655_v24  ;;  %421 = vadd.xlane.f32.xlu1 %v416_v25  ;;  %423 = vadd.xlane.f32.xlu0 %v417_v21  ;;  %v4863_v28 = vsub.f32 %v375_v5, %v656_v26  ;;  %v3469_v21 = vld [vmem:[#allocation8 + $0x3] ss:$0 sm:$0xff] }
 0x10b   : > { %v659_v30 = vmul.f32 %v4861_v27, %v4861_v27  ;;  %v660_v31 = vmul.f32 %v4863_v28, %v4863_v28 }
 0x10d   : > { %425 = vadd.xlane.f32.xlu1 %v418_v29  ;;  %661 = vadd.xlane.f32.xlu0 %v659_v30 }
 0x111   : > { %663 = vadd.xlane.f32.xlu1 %v660_v31  ;;  %v3492_v31 = vld [vmem:[#allocation8] ss:$0 sm:$0xff] }
 0x18e   : > { %v420_v56 = vpop.xlane.xlu0 %419 }
 0x18f   : > { %v427_v57 = vmul.f32 0.0078125, %v420_v56  ;;  %v3471_v56 = vld [vmem:[#allocation8 + $0x6] ss:$0 sm:$0xff] }
 0x191   : > { %v431_v58 = vadd.f32 1e-05, %v427_v57 }
 0x192   : > { %v422_v59 = vpop.xlane.xlu1 %421  ;;  %v424_v60 = vpop.xlane.xlu0 %423 }
 0x193   : > { %4267 = vrsqrt.f32 %v431_v58  ;;  %v428_v61 = vmul.f32 0.0078125, %v422_v59  ;;  %v429_v62 = vmul.f32 0.0078125, %v424_v60 }
 0x195   : > { %v432_v63 = vadd.f32 1e-05, %v428_v61  ;;  %v433_v0 = vadd.f32 1e-05, %v429_v62 }
 0x196   : > { %v426_v1 = vpop.xlane.xlu1 %425  ;;  %v662_v2 = vpop.xlane.xlu0 %661 }
 0x197   : > { %4269 = vrsqrt.f32 %v432_v63  ;;  %v430_v3 = vmul.f32 0.0078125, %v426_v1  ;;  %v665_v4 = vmul.f32 0.0078125, %v662_v2 }
 0x198   : > { %4271 = vrsqrt.f32 %v433_v0 }
 0x199   : > { %v434_v5 = vadd.f32 1e-05, %v430_v3  ;;  %v667_v6 = vadd.f32 1e-05, %v665_v4 }
 0x19a   : > { %v664_v7 = vpop.xlane.xlu1 %663 }
 0x19b   : > { %4273 = vrsqrt.f32 %v434_v5  ;;  %v666_v8 = vmul.f32 0.0078125, %v664_v7 }
 0x19c   : > { %4275 = vrsqrt.f32 %v667_v6  ;;  %v3494_v6 = vld [vmem:[#allocation8 + $0x4] ss:$0 sm:$0xff] }
 0x19d   : > { %v668_v9 = vadd.f32 1e-05, %v666_v8 }
 0x19f   : > { %4277 = vrsqrt.f32 %v668_v9 }
 0x1a0   : > { %v4268_v10 = vpop.eup %4267 }
 0x1a1   : > { %v439_v11 = vmul.f32 %v4268_v10, %v4847_v12 }
 0x1a3   : > { %v447_v17 = vmul.f32 %v3468_v14, %v439_v11 }
 0x1a4   : > { %v4270_v15 = vpop.eup %4269 }
 0x1a5   : > { %v440_v16 = vmul.f32 %v4270_v15, %v4853_v19  ;;  %v4272_v18 = vpop.eup %4271  ;;  %v455_v25 = vadd.f32 %v3469_v21, %v447_v17 }
 0x1a6   : > { %v441_v29 = vmul.f32 %v4272_v18, %v4849_v13 }
 0x1a7   : > { %v448_v22 = vmul.f32 %v3468_v14, %v440_v16 }
 0x1a8   : > { %v4274_v23 = vpop.eup %4273  ;;  %v449_v19 = vmul.f32 %v3468_v14, %v441_v29 }
 0x1a9   : > { %v4276_v24 = vpop.eup %4275  ;;  %v456_v26 = vadd.f32 %v3469_v21, %v448_v22  ;;  %v442_v30 = vmul.f32 %v4274_v23, %v4855_v20 }
 0x1aa   : > { %v671_v32 = vmul.f32 %v4276_v24, %v4861_v27  ;;  %v457_v41 = vadd.f32 %v3469_v21, %v449_v19 }
 0x1ab   : > { %v459_v12 = vpack.c.bf16 %v456_v26, %v455_v25  ;;  %v450_v33 = vmul.f32 %v3468_v14, %v442_v30 }
 0x1ac   : > { %v4278_v34 = vpop.eup %4277  ;;  %v677_v36 = vmul.f32 %v3492_v31, %v671_v32 }
 0x1ad   : > { %598 = vmatmul.mubr.bf16.vlgmr.msra.gmra.mxu0 %v459_v12  ;;  %v672_v35 = vmul.f32 %v4278_v34, %v4863_v28  ;;  %v458_v39 = vadd.f32 %v3469_v21, %v450_v33 }
 0x1ae   : > { %607 = vmatprep.mubr.bf16.mxu0 %v4619_v51  ;;  %v683_v13 = vadd.f32 %v3493_v38, %v677_v36 }
 0x1af   : > { %v678_v40 = vmul.f32 %v3492_v31, %v672_v35  ;;  %v460_v20 = vpack.c.bf16 %v458_v39, %v457_v41 }
 0x1b1   : > { %v684_v42 = vadd.f32 %v3493_v38, %v678_v40 }
 0x1b3   : > { %v685_v43 = vpack.c.bf16 %v684_v42, %v683_v13 }
 0x1b5   : > { %608 = vmatmul.mubr.bf16.gmra.mxu0 %v460_v20  ;;  %3794 = vmatmul.mubr.bf16.vlgmr.msra.gmra.mxu1 %v685_v43 }
 0x1b6   : > { %3801 = vmatprep.mubr.msk.bf16.mxu0 %vm4620_vm0, %v4618_v37  ;;  %3809 = vmatprep.mubr.msk.bf16.mxu1 %vm4620_vm0, %v4618_v37 }
 0x26d   : > { %v599_v27 = vpop.f32.mrf.mxu0 }
 0x26e   : > { %v600_v2 = vadd.f32 %v3470_v50, %v599_v27  ;;  %v4163_v27 = vld [vmem:[#allocation9 + $0xc] ss:$40 sps:$4 sm:$0xff]  }
 0x26f   : > { %v601_v28 = vpop.f32.mrf.mxu0 }
 0x270   : > { %v602_v3 = vadd.f32 %v3471_v56, %v601_v28 }
 0x271   : > { %v603_v44 = vpop.f32.mrf.mxu0 }
 0x272   : > { %v604_v62 = vadd.f32 %v3470_v50, %v603_v44 }
 0x273   : > { %v605_v45 = vpop.f32.mrf.mxu0 }
 0x274   : > { %v606_v63 = vadd.f32 %v3471_v56, %v605_v45  ;;  %v4906_v4 = vpack.c.bf16 %v604_v62, %v600_v2 }
 0x275   : > { %v609_v46 = vpop.f32.mrf.mxu0  ;;  %v788_v47 = vpop.f32.mrf.mxu1 }
 0x276   : > { %v610_v54 = vadd.f32 %v3470_v50, %v609_v46  ;;  %v4908_v5 = vpack.c.bf16 %v606_v63, %v602_v3  ;;  %v789_v8 = vadd.f32 %v3494_v6, %v788_v47  ;;  %v813_v9 = vsel %vm808_vm1, %v4906_v4, 0 }
 0x277   : > { %v611_v48 = vpop.f32.mrf.mxu0  ;;  %v3795_v49 = vpop.f32.mrf.mxu1 }
 0x278   : > { %v612_v59 = vadd.f32 %v3471_v56, %v611_v48  ;;  %v795_v11 = vmul.f32 0.25, %v789_v8 }
 0x279   : > { %v613_v52 = vpop.f32.mrf.mxu0  ;;  %v791_v53 = vpop.f32.mrf.mxu1 }
 0x27a   : > { %v614_v55 = vadd.f32 %v3470_v50, %v613_v52  ;;  %v792_v7 = vadd.f32 %v3494_v6, %v791_v53 }
 0x27b   : > { %v615_v57 = vpop.f32.mrf.mxu0  ;;  %v3796_v58 = vpop.f32.mrf.mxu1 }
 0x27c   : > { %v4897_v60 = vpack.c.bf16 %v614_v55, %v610_v54  ;;  %v616_v61 = vadd.f32 %v3471_v56, %v615_v57  ;;  %v796_v10 = vmul.f32 0.25, %v792_v7 }
 0x27e   : > { %v4899_v0 = vpack.c.bf16 %v616_v61, %v612_v59  ;;  %v816_v1 = vsel %vm808_vm1, %v4897_v60, 0  ;;  %v4915_v14 = vpack.c.bf16 %v796_v10, %v795_v11 }
 0x27f   : > { %3798 = vmatpush3.bf16.xpose.msra.mxu0 %v816_v1 }
 0x280   : > { %3806 = vmatpush3.bf16.msra.mxu1 %v4899_v0  ;;  %3799 = vmatprep.subr.bf16.mxu0 %v4618_v37 }
 0x281   : > { %3807 = vmatprep.subr.bf16.mxu1 %v4618_v37 }
 0x284   : > { %3808 = vmatpush3.bf16.msra.mxu1 %v4908_v5 }
 0x285   : > { %3813 = vmatprep.subr.bf16.mxu1 %v4618_v37 }
 0x287   : > { %3800 = vmatpush3.bf16.xpose.msra.mxu0 %v813_v9 }
 0x288   : > { %3821 = vmatprep.subr.bf16.mxu0 %v4618_v37 }
 0x28e   : > { %3802 = vmatmul.mubr.msk.bf16.vlgmr.msra.gmra.mxu0 %vm808_vm1, %v4915_v14 }
 0x28f   : > { %3825 = vmatprep.mubr.msk.bf16.mxu0 %vm4620_vm0, %v4618_v37 }
 0x34e   : > { %v852_v15 = vpop.f32.mrf.mxu0 }
 0x34f   : > { %v860_v16 = vsel %vm859_vm2, %v852_v15, -inf }
 0x350   : > { %861 = vmax.xlane.f32.xlu0 %v860_v16  ;;  %v3803_v17 = vpop.f32.mrf.mxu0 }
 0x352   : > { %v855_v18 = vpop.f32.mrf.mxu0 }
 0x353   : > { %v863_v21 = vsel %vm859_vm2, %v855_v18, -inf }
 0x354   : > { %864 = vmax.xlane.f32.xlu1 %v863_v21  ;;  %v3804_v22 = vpop.f32.mrf.mxu0 }
 0x3d9   : > { %v862_v23 = vpop.xlane.xlu0 %861 }
 0x3da   : > { %v866_v24 = vsub.f32 %v852_v15, %v862_v23  ;;  %v4164_v23 = vld [vmem:[#allocation9 + $0x5c] ss:$40 sps:$4 sm:$0xff]  }
 0x3dc   : > { %v868_v25 = vmul.f32 1.442695, %v866_v24 }
 0x3dd   : > { %v865_v26 = vpop.xlane.xlu1 %864 }
 0x3de   : > { %4279 = vpow2.f32 %v868_v25  ;;  %v867_v29 = vsub.f32 %v855_v18, %v865_v26 }
 0x3e0   : > { %v870_v30 = vmul.f32 1.442695, %v867_v29 }
 0x3e2   : > { %4281 = vpow2.f32 %v870_v30 }
 0x3eb   : > { %v4280_v31 = vpop.eup %4279 }
 0x3ec   : > { %v872_v32 = vsel %vm859_vm2, %v4280_v31, 0.0 }
 0x3ed   : > { %873 = vadd.xlane.f32.xlu0 %v872_v32 }
 0x3ef   : > { %v4282_v12 = vpop.eup %4281 }
 0x3f0   : > { %v875_v33 = vsel %vm859_vm2, %v4282_v12, 0.0 }
 0x3f1   : > { %876 = vadd.xlane.f32.xlu1 %v875_v33 }
 0x402   : > { %941 = vrot.lane.b32.xlu1 %v4906_v4, %s4621_s27 }
 0x403   : > { %943 = vrot.lane.b32.xlu0 %v4897_v60, %s4621_s27 }
 0x406   : > { %939 = vrot.lane.b32.xlu1 %v4915_v14, %s4621_s27 }
 0x476   : > { %v874_v34 = vpop.xlane.xlu0 %873 }
 0x477   : > { %4283 = vrcp.f32 %v874_v34 }
 0x47a   : > { %v877_v19 = vpop.xlane.xlu1 %876  ;;  %v944_v40 = vpop.permute.xlu0 %943 }
 0x47b   : > { %4285 = vrcp.f32 %v877_v19  ;;  %v952_v13 = vsel %vm808_vm1, %v944_v40, 0 }
 0x47e   : > { %v942_v42 = vpop.permute.xlu1 %941 }
 0x47f   : > { %v949_v20 = vsel %vm808_vm1, %v942_v42, 0 }
 0x482   : > { %v940_v43 = vpop.permute.xlu1 %939 }
 0x484   : > { %v4284_v35 = vpop.eup %4283 }
 0x485   : > { %v880_v38 = vmul.f32 %v4284_v35, %v4280_v31 }
 0x488   : > { %v4286_v36 = vpop.eup %4285 }
 0x489   : > { %v881_v39 = vmul.f32 %v4286_v36, %v4282_v12 }
 0x48b   : > { %v882_v41 = vpack.c.bf16 %v881_v39, %v880_v38 }
 0x48d   : > { %3810 = vmatmul.mubr.msk.bf16.vlgmr.msra.gmra.mxu1 %vm859_vm2, %v882_v41 }
 0x48e   : > { %3814 = vmatpush3.bf16.xpose.msra.mxu1 %v952_v13  ;;  %3817 = vmatprep.mubr.msk.bf16.mxu1 %vm4620_vm0, %v4618_v37 }
 0x48f   : > { %3815 = vmatprep.subr.bf16.mxu1 %v4618_v37 }
 0x496   : > { %3816 = vmatpush3.bf16.xpose.msra.mxu1 %v949_v20 }
 0x497   : > { %3835 = vmatprep.subr.bf16.mxu1 %v4618_v37 }
 0x49d   : > { %3818 = vmatmul.mubr.msk.bf16.vlgmr.msra.gmra.mxu1 %vm808_vm1, %v940_v43 }
 0x49e   : > { %3837 = vmatprep.mubr.msk.bf16.mxu1 %vm4620_vm0, %v4618_v37  ;;  %3836 = vmatpush3.bf16.msra.mxu1 %v4163_v27 }
 0x49f   : > { %3849 = vmatprep.subr.bf16.mxu1 %v4618_v37 }
 0x54d   : > { %v928_v28 = vpop.f32.mrf.mxu1 }
 0x54f   : > { %v3811_v44 = vpop.f32.mrf.mxu1 }
 0x551   : > { %v931_v45 = vpop.f32.mrf.mxu1 }
 0x552   : > { %v937_v46 = vpack.c.bf16 %v931_v45, %v928_v28 }
 0x553   : > { %v3812_v47 = vpop.f32.mrf.mxu1 }
 0x554   : > { %3838 = vmatmul.mubr.msk.bf16.vlgmr.msra.gmra.mxu1 %vm808_vm1, %v937_v46 }
 0x555   : > { %3853 = vmatprep.mubr.msk.bf16.mxu1 %vm4620_vm0, %v4618_v37 }
 0x55d   : > { %v988_v48 = vpop.f32.mrf.mxu1 }
 0x55e   : > { %v995_v49 = vsel %vm859_vm2, %v988_v48, -inf }
 0x55f   : > { %996 = vmax.xlane.f32.xlu1 %v995_v49  ;;  %v3819_v50 = vpop.f32.mrf.mxu1 }
 0x561   : > { %v991_v52 = vpop.f32.mrf.mxu1 }
 0x562   : > { %v998_v53 = vsel %vm859_vm2, %v991_v52, -inf }
 0x563   : > { %999 = vmax.xlane.f32.xlu0 %v998_v53  ;;  %v3820_v54 = vpop.f32.mrf.mxu1 }
 0x570   : > { %1020 = vrot.lane.b32.xlu1 %v4899_v0, %s4621_s27 }
 0x574   : > { %1175 = vrot.lane.b32.xlu1 %v4897_v60, %s4622_s29 }
 0x578   : > { %1173 = vrot.lane.b32.xlu1 %v4906_v4, %s4622_s29 }
 0x57c   : > { %1171 = vrot.lane.b32.xlu1 %v4915_v14, %s4622_s29 }
 0x580   : > { %1357 = vrot.lane.b32.xlu1 %v4906_v4, %s4623_s15 }
 0x5e8   : > { %v997_v55 = vpop.xlane.xlu1 %996 }
 0x5e9   : > { %v1001_v56 = vsub.f32 %v988_v48, %v997_v55 }
 0x5eb   : > { %v1003_v57 = vmul.f32 1.442695, %v1001_v56 }
 0x5ec   : > { %v1021_v58 = vpop.permute.xlu1 %1020  ;;  %v1000_v59 = vpop.xlane.xlu0 %999 }
 0x5ed   : > { %4287 = vpow2.f32 %v1003_v57  ;;  %v1002_v61 = vsub.f32 %v991_v52, %v1000_v59  ;;  %3822 = vmatpush3.bf16.msra.mxu0 %v1021_v58 }
 0x5ee   : > { %3823 = vmatprep.subr.bf16.mxu0 %v4618_v37 }
 0x5ef   : > { %v1005_v62 = vmul.f32 1.442695, %v1002_v61 }
 0x5f0   : > { %v1176_v26 = vpop.permute.xlu1 %1175 }
 0x5f1   : > { %4289 = vpow2.f32 %v1005_v62  ;;  %v1184_v32 = vsel %vm808_vm1, %v1176_v26, 0 }
 0x5f4   : > { %v1174_v12 = vpop.permute.xlu1 %1173 }
 0x5f5   : > { %v1181_v33 = vsel %vm808_vm1, %v1174_v12, 0 }
 0x5f8   : > { %v1172_v19 = vpop.permute.xlu1 %1171 }
 0x5fa   : > { %v4288_v63 = vpop.eup %4287 }
 0x5fb   : > { %v1007_v1 = vsel %vm859_vm2, %v4288_v63, 0.0 }
 0x5fc   : > { %1008 = vadd.xlane.f32.xlu0 %v1007_v1  ;;  %v1358_v36 = vpop.permute.xlu1 %1357 }
 0x5fd   : > { %v1365_v38 = vsel %vm808_vm1, %v1358_v36, 0 }
 0x5fe   : > { %v4290_v2 = vpop.eup %4289 }
 0x5ff   : > { %v1010_v3 = vsel %vm859_vm2, %v4290_v2, 0.0 }
 0x600   : > { %1011 = vadd.xlane.f32.xlu0 %v1010_v3 }
 0x614   : > { %v4960_v6 = vpop.f32.mrf.mxu1 }
 0x616   : > { %1018 = vrot.lane.b32.xlu0 %v4908_v5, %s4621_s27  ;;  %v3839_v7 = vpop.f32.mrf.mxu1 }
 0x618   : > { %v4964_v8 = vpop.f32.mrf.mxu1 }
 0x61a   : > { %1359 = vrot.lane.b32.xlu0 %v4897_v60, %s4623_s15  ;;  %v3840_v9 = vpop.f32.mrf.mxu1 }
 0x61e   : > { %1355 = vrot.lane.b32.xlu0 %v4915_v14, %s4623_s15 }
 0x685   : > { %v1009_v10 = vpop.xlane.xlu0 %1008 }
 0x686   : > { %4291 = vrcp.f32 %v1009_v10 }
 0x689   : > { %v1012_v11 = vpop.xlane.xlu0 %1011 }
 0x68a   : > { %4293 = vrcp.f32 %v1012_v11 }
 0x68d   : > { %v1019_v15 = vpop.permute.xlu0 %1018 }
 0x68e   : > { %3824 = vmatpush3.bf16.msra.mxu0 %v1019_v15 }
 0x68f   : > { %3829 = vmatprep.subr.bf16.mxu0 %v4618_v37 }
 0x691   : > { %v1360_v34 = vpop.permute.xlu0 %1359 }
 0x692   : > { %v1368_v35 = vsel %vm808_vm1, %v1360_v34, 0 }
 0x693   : > { %v4292_v16 = vpop.eup %4291 }
 0x694   : > { %v1015_v18 = vmul.f32 %v4292_v16, %v4288_v63 }
 0x695   : > { %v1356_v39 = vpop.permute.xlu0 %1355 }
 0x697   : > { %v4294_v17 = vpop.eup %4293 }
 0x698   : > { %v1016_v21 = vmul.f32 %v4294_v17, %v4290_v2 }
 0x69a   : > { %v1017_v22 = vpack.c.bf16 %v1016_v21, %v1015_v18 }
 0x69c   : > { %3826 = vmatmul.mubr.msk.bf16.vlgmr.msra.gmra.mxu0 %vm859_vm2, %v1017_v22 }
 0x69d   : > { %3831 = vmatprep.mubr.msk.bf16.mxu0 %vm4620_vm0, %v4618_v37  ;;  %3830 = vmatpush3.bf16.msra.mxu0 %v4164_v23 }
 0x69e   : > { %3841 = vmatprep.subr.bf16.mxu0 %v4618_v37 }
 0x75c   : > { %v1061_v24 = vpop.f32.mrf.mxu0 }
 0x75e   : > { %v3827_v25 = vpop.f32.mrf.mxu0 }
 0x760   : > { %v1064_v29 = vpop.f32.mrf.mxu0 }
 0x761   : > { %v1070_v30 = vpack.c.bf16 %v1064_v29, %v1061_v24 }
 0x762   : > { %v3828_v31 = vpop.f32.mrf.mxu0 }
 0x763   : > { %3832 = vmatmul.mubr.msk.bf16.vlgmr.msra.gmra.mxu0 %vm808_vm1, %v1070_v30 }
 0x764   : > { %3842 = vmatpush3.bf16.xpose.msra.mxu0 %v1184_v32  ;;  %3845 = vmatprep.mubr.msk.bf16.mxu0 %vm4620_vm0, %v4618_v37 }
 0x765   : > { %3843 = vmatprep.subr.bf16.mxu0 %v4618_v37 }
 0x76c   : > { %3844 = vmatpush3.bf16.xpose.msra.mxu0 %v1181_v33 }
 0x76d   : > { %3863 = vmatprep.subr.bf16.mxu0 %v4618_v37 }
 0x773   : > { %3846 = vmatmul.mubr.msk.bf16.vlgmr.msra.gmra.mxu0 %vm808_vm1, %v1172_v19 }
 0x774   : > { %3864 = vmatpush3.bf16.xpose.msra.mxu0 %v1368_v35  ;;  %3867 = vmatprep.mubr.msk.bf16.mxu0 %vm4620_vm0, %v4618_v37 }
 0x775   : > { %3865 = vmatprep.subr.bf16.mxu0 %v4618_v37 }
 0x77c   : > { %3866 = vmatpush3.bf16.xpose.msra.mxu0 %v1365_v38 }
 0x77d   : > { %3885 = vmatprep.subr.bf16.mxu0 %v4618_v37 }
 0x783   : > { %3868 = vmatmul.mubr.msk.bf16.vlgmr.msra.gmra.mxu0 %vm808_vm1, %v1356_v39 }
 0x784   : > { %3889 = vmatprep.mubr.msk.bf16.mxu0 %vm4620_vm0, %v4618_v37 }
 0x823   : > { %v4992_v40 = vpop.f32.mrf.mxu0 }
 0x825   : > { %v3833_v41 = vpop.f32.mrf.mxu0 }
 0x827   : > { %v4994_v13 = vpop.f32.mrf.mxu0 }
 0x829   : > { %v3834_v42 = vpop.f32.mrf.mxu0 }
 0x833   : > { %v1220_v20 = vpop.f32.mrf.mxu0 }
 0x834   : > { %v1227_v43 = vsel %vm859_vm2, %v1220_v20, -inf }
 0x835   : > { %1228 = vmax.xlane.f32.xlu1 %v1227_v43  ;;  %v3847_v27 = vpop.f32.mrf.mxu0 }
 0x837   : > { %v1223_v28 = vpop.f32.mrf.mxu0 }
 0x838   : > { %v1230_v44 = vsel %vm859_vm2, %v1223_v28, -inf }
 0x839   : > { %1231 = vmax.xlane.f32.xlu0 %v1230_v44  ;;  %v3848_v45 = vpop.f32.mrf.mxu0 }
 0x843   : > { %v4998_v46 = vpop.f32.mrf.mxu0 }
 0x844   : > { %v1411_v17 = vsel %vm859_vm2, %v4998_v46, -inf }
 0x845   : > { %v3869_v47 = vpop.f32.mrf.mxu0 }
 0x846   : > { %1252 = vrot.lane.b32.xlu1 %v4899_v0, %s4622_s29 }
 0x847   : > { %v5002_v48 = vpop.f32.mrf.mxu0 }
 0x848   : > { %v1414_v50 = vsel %vm859_vm2, %v5002_v48, -inf }
 0x849   : > { %v3870_v49 = vpop.f32.mrf.mxu0 }
 0x84a   : > { %1543 = vrot.lane.b32.xlu1 %v4897_v60, %s4624_s20 }
 0x84e   : > { %1541 = vrot.lane.b32.xlu1 %v4906_v4, %s4624_s20 }
 0x852   : > { %1539 = vrot.lane.b32.xlu1 %v4915_v14, %s4624_s20 }
 0x876   : > { %1415 = vmax.xlane.f32.xlu1 %v1414_v50 }
 0x887   : > { %1434 = vrot.lane.b32.xlu1 %v4908_v5, %s4623_s15 }
 0x88b   : > { %1727 = vrot.lane.b32.xlu1 %v4897_v60, %s4625_s13 }
 0x88f   : > { %1725 = vrot.lane.b32.xlu1 %v4906_v4, %s4625_s13 }
 0x8be   : > { %v1229_v52 = vpop.xlane.xlu1 %1228 }
 0x8bf   : > { %v1233_v53 = vsub.f32 %v1220_v20, %v1229_v52 }
 0x8c1   : > { %v1235_v54 = vmul.f32 1.442695, %v1233_v53 }
 0x8c2   : > { %v1253_v55 = vpop.permute.xlu1 %1252  ;;  %v1232_v56 = vpop.xlane.xlu0 %1231 }
 0x8c3   : > { %4295 = vpow2.f32 %v1235_v54  ;;  %v1234_v57 = vsub.f32 %v1223_v28, %v1232_v56  ;;  %3850 = vmatpush3.bf16.msra.mxu1 %v1253_v55  ;;  %v4165_v28 = vld [vmem:[#allocation9 + $0xac] ss:$40 sps:$4 sm:$0xff]  }
 0x8c4   : > { %3851 = vmatprep.subr.bf16.mxu1 %v4618_v37 }
 0x8c5   : > { %v1237_v58 = vmul.f32 1.442695, %v1234_v57 }
 0x8c6   : > { %v1544_v59 = vpop.permute.xlu1 %1543 }
 0x8c7   : > { %4297 = vpow2.f32 %v1237_v58  ;;  %v1552_v61 = vsel %vm808_vm1, %v1544_v59, 0 }
 0x8c8   : > { %3886 = vmatpush3.bf16.xpose.msra.mxu0 %v1552_v61 }
 0x8c9   : > { %3887 = vmatprep.subr.bf16.mxu0 %v4618_v37 }
 0x8ca   : > { %v1542_v62 = vpop.permute.xlu1 %1541 }
 0x8cb   : > { %v1549_v63 = vsel %vm808_vm1, %v1542_v62, 0 }
 0x8ce   : > { %v1540_v9 = vpop.permute.xlu1 %1539 }
 0x8d0   : > { %v4296_v1 = vpop.eup %4295  ;;  %3888 = vmatpush3.bf16.xpose.msra.mxu0 %v1549_v63 }
 0x8d1   : > { %v1239_v2 = vsel %vm859_vm2, %v4296_v1, 0.0  ;;  %3907 = vmatprep.subr.bf16.mxu0 %v4618_v37 }
 0x8d2   : > { %1240 = vadd.xlane.f32.xlu0 %v1239_v2 }
 0x8d4   : > { %v4298_v3 = vpop.eup %4297 }
 0x8d5   : > { %v1242_v7 = vsel %vm859_vm2, %v4298_v3, 0.0 }
 0x8d6   : > { %1243 = vadd.xlane.f32.xlu0 %v1242_v7 }
 0x8d7   : > { %3890 = vmatmul.mubr.msk.bf16.vlgmr.msra.gmra.mxu0 %vm808_vm1, %v1540_v9 }
 0x8d8   : > { %3911 = vmatprep.mubr.msk.bf16.mxu0 %vm4620_vm0, %v4618_v37 }
 0x8ec   : > { %1250 = vrot.lane.b32.xlu0 %v4908_v5, %s4622_s29 }
 0x8ff   : > { %v1416_v10 = vpop.xlane.xlu1 %1415 }
 0x900   : > { %v1418_v32 = vsub.f32 %v5002_v48, %v1416_v10 }
 0x902   : > { %v1421_v34 = vmul.f32 1.442695, %v1418_v32 }
 0x903   : > { %v5030_v11 = vpop.permute.xlu1 %1434 }
 0x907   : > { %v1728_v15 = vpop.permute.xlu1 %1727 }
 0x908   : > { %v1736_v16 = vsel %vm808_vm1, %v1728_v15, 0 }
 0x909   : > { %3908 = vmatpush3.bf16.xpose.msra.mxu0 %v1736_v16 }
 0x90a   : > { %3909 = vmatprep.subr.bf16.mxu0 %v4618_v37 }
 0x90b   : > { %1412 = vmax.xlane.f32.xlu0 %v1411_v17  ;;  %v1726_v18 = vpop.permute.xlu1 %1725 }
 0x90c   : > { %v1733_v21 = vsel %vm808_vm1, %v1726_v18, 0 }
 0x911   : > { %3910 = vmatpush3.bf16.xpose.msra.mxu0 %v1733_v21 }
 0x912   : > { %3929 = vmatprep.subr.bf16.mxu0 %v4618_v37 }
 0x95b   : > { %v1241_v22 = vpop.xlane.xlu0 %1240 }
 0x95c   : > { %4299 = vrcp.f32 %v1241_v22 }
 0x95f   : > { %v1244_v23 = vpop.xlane.xlu0 %1243 }
 0x960   : > { %4301 = vrcp.f32 %v1244_v23  ;;  %v4166_v23 = vld [vmem:[#allocation9 + $0xfc] ss:$40 sps:$4 sm:$0xff]  }
 0x963   : > { %v1251_v24 = vpop.permute.xlu0 %1250 }
 0x964   : > { %3852 = vmatpush3.bf16.msra.mxu1 %v1251_v24  ;;  %v1165_v24 = vadd.f32 %v4960_v6, %v4992_v40 }
 0x965   : > { %3857 = vmatprep.subr.bf16.mxu1 %v4618_v37 }
 0x969   : > { %v4300_v25 = vpop.eup %4299 }
 0x96a   : > { %v1247_v29 = vmul.f32 %v4300_v25, %v4296_v1 }
 0x96d   : > { %v4302_v26 = vpop.eup %4301 }
 0x96e   : > { %v1248_v30 = vmul.f32 %v4302_v26, %v4298_v3 }
 0x970   : > { %v1249_v31 = vpack.c.bf16 %v1248_v30, %v1247_v29  ;;  %v1168_v30 = vadd.f32 %v4964_v8, %v4994_v13 }
 0x972   : > { %3854 = vmatmul.mubr.msk.bf16.vlgmr.msra.gmra.mxu1 %vm859_vm2, %v1249_v31 }
 0x973   : > { %3859 = vmatprep.mubr.msk.bf16.mxu1 %vm4620_vm0, %v4618_v37  ;;  %3858 = vmatpush3.bf16.msra.mxu1 %v4165_v28 }
 0x974   : > { %3871 = vmatprep.subr.bf16.mxu1 %v4618_v37 }
 0x994   : > { %v1413_v12 = vpop.xlane.xlu0 %1412 }
 0x995   : > { %v1417_v33 = vsub.f32 %v4998_v46, %v1413_v12 }
 0x997   : > { %v1419_v19 = vmul.f32 1.442695, %v1417_v33  ;;  %v1588_v35 = vpop.f32.mrf.mxu0 }
 0x998   : > { %v1595_v36 = vsel %vm859_vm2, %v1588_v35, -inf }
 0x999   : > { %4303 = vpow2.f32 %v1419_v19  ;;  %1596 = vmax.xlane.f32.xlu1 %v1595_v36  ;;  %v3891_v38 = vpop.f32.mrf.mxu0 }
 0x99a   : > { %4305 = vpow2.f32 %v1421_v34 }
 0x99b   : > { %v5045_v39 = vpop.f32.mrf.mxu0 }
 0x99c   : > { %v1598_v44 = vsel %vm859_vm2, %v5045_v39, -inf }
 0x99d   : > { %v3892_v41 = vpop.f32.mrf.mxu0 }
 0x9a6   : > { %v4304_v42 = vpop.eup %4303 }
 0x9a7   : > { %v1423_v20 = vsel %vm859_vm2, %v4304_v42, 0.0  ;;  %v4306_v43 = vpop.eup %4305 }
 0x9a8   : > { %1424 = vadd.xlane.f32.xlu0 %v1423_v20  ;;  %v1426_v27 = vsel %vm859_vm2, %v4306_v43, 0.0 }
 0x9aa   : > { %1620 = vrot.lane.b32.xlu1 %v4899_v0, %s4624_s20 }
 0x9ac   : > { %1427 = vadd.xlane.f32.xlu0 %v1426_v27 }
 0x9ae   : > { %1911 = vrot.lane.b32.xlu1 %v4897_v60, %s4626_s17 }
 0x9b2   : > { %1909 = vrot.lane.b32.xlu1 %v4906_v4, %s4626_s17 }
 0x9b6   : > { %1907 = vrot.lane.b32.xlu1 %v4915_v14, %s4626_s17 }
 0x9c2   : > { %1436 = vrot.lane.b32.xlu0 %v4899_v0, %s4623_s15 }
 0x9c6   : > { %1723 = vrot.lane.b32.xlu0 %v4915_v14, %s4625_s13 }
 0x9e5   : > { %1599 = vmax.xlane.f32.xlu0 %v1598_v44 }
 0xa22   : > { %v1597_v45 = vpop.xlane.xlu1 %1596 }
 0xa23   : > { %v1601_v46 = vsub.f32 %v1588_v35, %v1597_v45 }
 0xa25   : > { %v1603_v47 = vmul.f32 1.442695, %v1601_v46 }
 0xa26   : > { %v5066_v53 = vpop.permute.xlu1 %1620 }
 0xa27   : > { %4307 = vpow2.f32 %v1603_v47 }
 0xa2a   : > { %v1912_v61 = vpop.permute.xlu1 %1911 }
 0xa2b   : > { %v1920_v63 = vsel %vm808_vm1, %v1912_v61, 0 }
 0xa2e   : > { %v1910_v3 = vpop.permute.xlu1 %1909 }
 0xa2f   : > { %v1917_v10 = vsel %vm808_vm1, %v1910_v3, 0 }
 0xa31   : > { %v1425_v48 = vpop.xlane.xlu0 %1424 }
 0xa32   : > { %v1293_v49 = vpop.f32.mrf.mxu1  ;;  %4309 = vrcp.f32 %v1425_v48 }
 0xa34   : > { %v5064_v50 = vpop.eup %4307  ;;  %v3855_v52 = vpop.f32.mrf.mxu1 }
 0xa35   : > { %v1428_v54 = vpop.xlane.xlu0 %1427  ;;  %v1607_v55 = vsel %vm859_vm2, %v5064_v50, 0.0 }
 0xa36   : > { %4311 = vrcp.f32 %v1428_v54  ;;  %1608 = vadd.xlane.f32.xlu0 %v1607_v55  ;;  %v1296_v56 = vpop.f32.mrf.mxu1 }
 0xa37   : > { %v1302_v57 = vpack.c.bf16 %v1296_v56, %v1293_v49 }
 0xa38   : > { %v3856_v58 = vpop.f32.mrf.mxu1 }
 0xa39   : > { %v1437_v59 = vpop.permute.xlu0 %1436  ;;  %3860 = vmatmul.mubr.msk.bf16.vlgmr.msra.gmra.mxu1 %vm808_vm1, %v1302_v57 }
 0xa3a   : > { %3872 = vmatpush3.bf16.msra.mxu1 %v1437_v59  ;;  %3875 = vmatprep.mubr.msk.bf16.mxu1 %vm4620_vm0, %v4618_v37 }
 0xa3b   : > { %3873 = vmatprep.subr.bf16.mxu1 %v4618_v37 }
 0xa3d   : > { %v1724_v62 = vpop.permute.xlu0 %1723 }
 0xa3e   : > { %3874 = vmatpush3.bf16.msra.mxu1 %v5030_v11  ;;  %3912 = vmatmul.mubr.msk.bf16.vlgmr.msra.gmra.mxu0 %vm808_vm1, %v1724_v62  ;;  %v1908_v11 = vpop.permute.xlu1 %1907 }
 0xa3f   : > { %3930 = vmatpush3.bf16.xpose.msra.mxu0 %v1920_v63  ;;  %3933 = vmatprep.mubr.msk.bf16.mxu0 %vm4620_vm0, %v4618_v37  ;;  %v4310_v1 = vpop.eup %4309 }
 0xa40   : > { %3931 = vmatprep.subr.bf16.mxu0 %v4618_v37  ;;  %3879 = vmatprep.subr.bf16.mxu1 %v4618_v37  ;;  %v1431_v7 = vmul.f32 %v4310_v1, %v4304_v42 }
 0xa43   : > { %v4312_v2 = vpop.eup %4311 }
 0xa44   : > { %v1432_v9 = vmul.f32 %v4312_v2, %v4306_v43 }
 0xa46   : > { %v1433_v15 = vpack.c.bf16 %v1432_v9, %v1431_v7 }
 0xa47   : > { %3932 = vmatpush3.bf16.xpose.msra.mxu0 %v1917_v10 }
 0xa48   : > { %3876 = vmatmul.mubr.msk.bf16.vlgmr.msra.gmra.mxu1 %vm859_vm2, %v1433_v15  ;;  %3951 = vmatprep.subr.bf16.mxu0 %v4618_v37 }
 0xa49   : > { %3881 = vmatprep.mubr.msk.bf16.mxu1 %vm4620_vm0, %v4618_v37  ;;  %3880 = vmatpush3.bf16.msra.mxu1 %v4166_v23 }
 0xa4a   : > { %3893 = vmatprep.subr.bf16.mxu1 %v4618_v37 }
 0xa4e   : > { %3934 = vmatmul.mubr.msk.bf16.vlgmr.msra.gmra.mxu0 %vm808_vm1, %v1908_v11 }
 0xa4f   : > { %3955 = vmatprep.mubr.msk.bf16.mxu0 %vm4620_vm0, %v4618_v37 }
 0xa6e   : > { %v1600_v16 = vpop.xlane.xlu0 %1599 }
 0xa6f   : > { %v1602_v17 = vsub.f32 %v5045_v39, %v1600_v16 }
 0xa71   : > { %v1605_v18 = vmul.f32 1.442695, %v1602_v17 }
 0xa73   : > { %4313 = vpow2.f32 %v1605_v18 }
 0xa80   : > { %v4314_v21 = vpop.eup %4313 }
 0xa81   : > { %v1610_v22 = vsel %vm859_vm2, %v4314_v21, 0.0 }
 0xa82   : > { %1611 = vadd.xlane.f32.xlu0 %v1610_v22 }
 0xa98   : > { %1618 = vrot.lane.b32.xlu0 %v4908_v5, %s4624_s20 }
 0xabf   : > { %v1609_v40 = vpop.xlane.xlu0 %1608 }
 0xac0   : > { %4315 = vrcp.f32 %v1609_v40 }
 0xacd   : > { %v4316_v45 = vpop.eup %4315 }
 0xace   : > { %v1615_v47 = vmul.f32 %v4316_v45, %v5064_v50 }
 0xaf9   : > { %v1346_v25 = vpop.f32.mrf.mxu1 }
 0xafa   : > { %v5096_v26 = vadd.f32 %v1346_v25, %v1165_v24 }
 0xafb   : > { %v3861_v29 = vpop.f32.mrf.mxu1 }
 0xafd   : > { %v1349_v31 = vpop.f32.mrf.mxu1 }
 0xafe   : > { %v5100_v32 = vadd.f32 %v1349_v31, %v1168_v30  ;;  %v1772_v12 = vpop.f32.mrf.mxu0 }
 0xaff   : > { %v3862_v33 = vpop.f32.mrf.mxu1  ;;  %v1779_v34 = vsel %vm859_vm2, %v1772_v12, -inf }
 0xb00   : > { %v3913_v19 = vpop.f32.mrf.mxu0  ;;  %1780 = vmax.xlane.f32.xlu0 %v1779_v34 }
 0xb02   : > { %v1775_v35 = vpop.f32.mrf.mxu0 }
 0xb03   : > { %v1782_v36 = vsel %vm859_vm2, %v1775_v35, -inf }
 0xb04   : > { %1783 = vmax.xlane.f32.xlu1 %v1782_v36  ;;  %v3914_v6 = vpop.f32.mrf.mxu0 }
 0xb08   : > { %v1477_v38 = vpop.f32.mrf.mxu1 }
 0xb0a   : > { %v3877_v39 = vpop.f32.mrf.mxu1 }
 0xb0b   : > { %v1612_v41 = vpop.xlane.xlu0 %1611 }
 0xb0c   : > { %4317 = vrcp.f32 %v1612_v41  ;;  %v1480_v8 = vpop.f32.mrf.mxu1 }
 0xb0d   : > { %v1486_v13 = vpack.c.bf16 %v1480_v8, %v1477_v38 }
 0xb0e   : > { %v1956_v42 = vpop.f32.mrf.mxu0  ;;  %v3878_v20 = vpop.f32.mrf.mxu1 }
 0xb0f   : > { %3882 = vmatmul.mubr.msk.bf16.vlgmr.msra.gmra.mxu1 %vm808_vm1, %v1486_v13  ;;  %v1619_v28 = vpop.permute.xlu0 %1618  ;;  %v1963_v52 = vsel %vm859_vm2, %v1956_v42, -inf  ;;  %v4168_v13 = vld [vmem:[#allocation9 + $0x19c] ss:$40 sps:$4 sm:$0xff]  }
 0xb10   : > { %v3935_v43 = vpop.f32.mrf.mxu0  ;;  %3894 = vmatpush3.bf16.msra.mxu1 %v5066_v53  ;;  %3897 = vmatprep.mubr.msk.bf16.mxu1 %vm4620_vm0, %v4618_v37  ;;  %v4167_v53 = vld [vmem:[#allocation9 + $0x14c] ss:$40 sps:$4 sm:$0xff]  }
 0xb11   : > { %3895 = vmatprep.subr.bf16.mxu1 %v4618_v37 }
 0xb12   : > { %v5109_v27 = vpop.f32.mrf.mxu0 }
 0xb13   : > { %v1966_v22 = vsel %vm859_vm2, %v5109_v27, -inf }
 0xb14   : > { %3896 = vmatpush3.bf16.msra.mxu1 %v1619_v28  ;;  %v3936_v44 = vpop.f32.mrf.mxu0 }
 0xb15   : > { %1802 = vrot.lane.b32.xlu1 %v4908_v5, %s4625_s13  ;;  %3901 = vmatprep.subr.bf16.mxu1 %v4618_v37 }
 0xb19   : > { %v4318_v46 = vpop.eup %4317  ;;  %2095 = vrot.lane.b32.xlu1 %v4897_v60, %s4627_s8 }
 0xb1a   : > { %v1616_v48 = vmul.f32 %v4318_v46, %v4314_v21 }
 0xb1c   : > { %v1617_v49 = vpack.c.bf16 %v1616_v48, %v1615_v47 }
 0xb1d   : > { %2093 = vrot.lane.b32.xlu1 %v4906_v4, %s4627_s8 }
 0xb1e   : > { %3898 = vmatmul.mubr.msk.bf16.vlgmr.msra.gmra.mxu1 %vm859_vm2, %v1617_v49 }
 0xb1f   : > { %3903 = vmatprep.mubr.msk.bf16.mxu1 %vm4620_vm0, %v4618_v37  ;;  %3902 = vmatpush3.bf16.msra.mxu1 %v4167_v53 }
 0xb20   : > { %3915 = vmatprep.subr.bf16.mxu1 %v4618_v37 }
 0xb41   : > { %1964 = vmax.xlane.f32.xlu1 %v1963_v52 }
 0xb52   : > { %1988 = vrot.lane.b32.xlu1 %v4899_v0, %s4626_s17 }
 0xb89   : > { %v1781_v60 = vpop.xlane.xlu0 %1780 }
 0xb8a   : > { %v1785_v50 = vsub.f32 %v1772_v12, %v1781_v60 }
 0xb8c   : > { %v1787_v54 = vmul.f32 1.442695, %v1785_v50 }
 0xb8d   : > { %v1784_v55 = vpop.xlane.xlu1 %1783 }
 0xb8e   : > { %4319 = vpow2.f32 %v1787_v54  ;;  %v1786_v4 = vsub.f32 %v1775_v35, %v1784_v55 }
 0xb90   : > { %v1789_v56 = vmul.f32 1.442695, %v1786_v4 }
 0xb91   : > { %v1803_v57 = vpop.permute.xlu1 %1802 }
 0xb92   : > { %4321 = vpow2.f32 %v1789_v56 }
 0xb95   : > { %v2096_v58 = vpop.permute.xlu1 %2095 }
 0xb96   : > { %v2104_v59 = vsel %vm808_vm1, %v2096_v58, 0 }
 0xb97   : > { %3952 = vmatpush3.bf16.xpose.msra.mxu0 %v2104_v59 }
 0xb98   : > { %3953 = vmatprep.subr.bf16.mxu0 %v4618_v37 }
 0xb99   : > { %v2094_v62 = vpop.permute.xlu1 %2093 }
 0xb9a   : > { %v2101_v1 = vsel %vm808_vm1, %v2094_v62, 0 }
 0xb9b   : > { %v4320_v61 = vpop.eup %4319 }
 0xb9c   : > { %v1791_v63 = vsel %vm859_vm2, %v4320_v61, 0.0 }
 0xb9d   : > { %1792 = vadd.xlane.f32.xlu0 %v1791_v63 }
 0xb9f   : > { %v4322_v2 = vpop.eup %4321  ;;  %3954 = vmatpush3.bf16.xpose.msra.mxu0 %v2101_v1 }
 0xba0   : > { %v1794_v3 = vsel %vm859_vm2, %v4322_v2, 0.0  ;;  %3973 = vmatprep.subr.bf16.mxu0 %v4618_v37 }
 0xba1   : > { %1795 = vadd.xlane.f32.xlu0 %v1794_v3 }
 0xbb7   : > { %1804 = vrot.lane.b32.xlu0 %v4899_v0, %s4625_s13 }
 0xbbb   : > { %2091 = vrot.lane.b32.xlu0 %v4915_v14, %s4627_s8 }
 0xbca   : > { %v1965_v7 = vpop.xlane.xlu1 %1964 }
 0xbcb   : > { %v1969_v9 = vsub.f32 %v1956_v42, %v1965_v7 }
 0xbcd   : > { %v1971_v10 = vmul.f32 1.442695, %v1969_v9 }
 0xbcf   : > { %4323 = vpow2.f32 %v1971_v10  ;;  %v1530_v15 = vpop.f32.mrf.mxu1 }
 0xbd0   : > { %v1537_v11 = vadd.f32 %v1530_v15, %v5096_v26 }
 0xbd1   : > { %v3883_v16 = vpop.f32.mrf.mxu1 }
 0xbd3   : > { %v1533_v17 = vpop.f32.mrf.mxu1 }
 0xbd4   : > { %v1538_v18 = vadd.f32 %v1533_v17, %v5100_v32 }
 0xbd5   : > { %v3884_v21 = vpop.f32.mrf.mxu1 }
 0xbda   : > { %1967 = vmax.xlane.f32.xlu0 %v1966_v22 }
 0xbdc   : > { %v5140_v23 = vpop.eup %4323 }
 0xbdd   : > { %v1975_v14 = vsel %vm859_vm2, %v5140_v23, 0.0 }
 0xbde   : > { %1976 = vadd.xlane.f32.xlu0 %v1975_v14  ;;  %v1661_v24 = vpop.f32.mrf.mxu1 }
 0xbe0   : > { %v3899_v25 = vpop.f32.mrf.mxu1 }
 0xbe2   : > { %v1664_v29 = vpop.f32.mrf.mxu1 }
 0xbe3   : > { %v1670_v30 = vpack.c.bf16 %v1664_v29, %v1661_v24 }
 0xbe4   : > { %v3900_v26 = vpop.f32.mrf.mxu1 }
 0xbe5   : > { %3904 = vmatmul.mubr.msk.bf16.vlgmr.msra.gmra.mxu1 %vm808_vm1, %v1670_v30 }
 0xbe6   : > { %3919 = vmatprep.mubr.msk.bf16.mxu1 %vm4620_vm0, %v4618_v37 }
 0xc26   : > { %v1793_v31 = vpop.xlane.xlu0 %1792 }
 0xc27   : > { %4325 = vrcp.f32 %v1793_v31 }
 0xc2a   : > { %v1796_v32 = vpop.xlane.xlu0 %1795 }
 0xc2b   : > { %4327 = vrcp.f32 %v1796_v32 }
 0xc2e   : > { %v1805_v12 = vpop.permute.xlu0 %1804 }
 0xc2f   : > { %3916 = vmatpush3.bf16.msra.mxu1 %v1805_v12 }
 0xc30   : > { %3917 = vmatprep.subr.bf16.mxu1 %v4618_v37 }
 0xc32   : > { %v2092_v33 = vpop.permute.xlu0 %2091 }
 0xc33   : > { %3918 = vmatpush3.bf16.msra.mxu1 %v1803_v57  ;;  %3956 = vmatmul.mubr.msk.bf16.vlgmr.msra.gmra.mxu0 %vm808_vm1, %v2092_v33  ;;  %v1989_v57 = vpop.permute.xlu1 %1988 }
 0xc34   : > { %3923 = vmatprep.subr.bf16.mxu1 %v4618_v37  ;;  %3989 = vmatprep.mubr.msk.bf16.mxu0 %vm4620_vm0, %v4618_v37  ;;  %v4326_v34 = vpop.eup %4325 }
 0xc35   : > { %v1799_v35 = vmul.f32 %v4326_v34, %v4320_v61 }
 0xc38   : > { %v4328_v19 = vpop.eup %4327 }
 0xc39   : > { %v1800_v36 = vmul.f32 %v4328_v19, %v4322_v2  ;;  %v4169_v2 = vld [vmem:[#allocation9 + $0x1ec] ss:$40 sps:$4 sm:$0xff]  }
 0xc3b   : > { %v1801_v6 = vpack.c.bf16 %v1800_v36, %v1799_v35 }
 0xc3d   : > { %3920 = vmatmul.mubr.msk.bf16.vlgmr.msra.gmra.mxu1 %vm859_vm2, %v1801_v6 }
 0xc3e   : > { %3925 = vmatprep.mubr.msk.bf16.mxu1 %vm4620_vm0, %v4618_v37  ;;  %3924 = vmatpush3.bf16.msra.mxu1 %v4168_v13  ;;  %v4176_v13 = vld [vmem:[#allocation9 + $0x154] ss:$40 sps:$4 sm:$0xff]  }
 0xc3f   : > { %3937 = vmatprep.subr.bf16.mxu1 %v4618_v37 }
 0xc63   : > { %v1968_v40 = vpop.xlane.xlu0 %1967 }
 0xc64   : > { %v1970_v38 = vsub.f32 %v5109_v27, %v1968_v40 }
 0xc66   : > { %v1973_v39 = vmul.f32 1.442695, %v1970_v38  ;;  %v4170_v38 = vld [vmem:[#allocation9 + $0x23c] ss:$40 sps:$4 sm:$0xff]  }
 0xc67   : > { %v1977_v53 = vpop.xlane.xlu0 %1976 }
 0xc68   : > { %4329 = vpow2.f32 %v1973_v39  ;;  %v4171_v39 = vld [vmem:[#allocation9 + $0x244] ss:$40 sps:$4 sm:$0xff]  }
 0xc69   : > { %4331 = vrcp.f32 %v1977_v53  ;;  %3974 = vmatpush3.bf16.msra.mxu0 %v4171_v39 }
 0xc6a   : > { %3975 = vmatprep.subr.bf16.mxu0 %v4618_v37 }
 0xc75   : > { %v4330_v41 = vpop.eup %4329 }
 0xc76   : > { %v1978_v8 = vsel %vm859_vm2, %v4330_v41, 0.0  ;;  %v4332_v59 = vpop.eup %4331 }
 0xc77   : > { %1979 = vadd.xlane.f32.xlu0 %v1978_v8  ;;  %v1983_v62 = vmul.f32 %v4332_v59, %v5140_v23  ;;  %v4174_v8 = vld [vmem:[#allocation9 + $0x1a4] ss:$40 sps:$4 sm:$0xff]   ;;  %v4185_v59 = vld [vmem:[#allocation9 + $0x60] ss:$40 sps:$4 sm:$0xff]  }
 0xc8d   : > { %1986 = vrot.lane.b32.xlu0 %v4908_v5, %s4626_s17 }
 0xca5   : > { %v1714_v42 = vpop.f32.mrf.mxu1 }
 0xca6   : > { %v1721_v20 = vadd.f32 %v1714_v42, %v1537_v11  ;;  %v4178_v42 = vld [vmem:[#allocation9 + $0x104] ss:$40 sps:$4 sm:$0xff]  }
 0xca7   : > { %v3905_v43 = vpop.f32.mrf.mxu1 }
 0xca9   : > { %v1717_v28 = vpop.f32.mrf.mxu1 }
 0xcaa   : > { %v1722_v44 = vadd.f32 %v1717_v28, %v1538_v18 }
 0xcab   : > { %v3906_v45 = vpop.f32.mrf.mxu1 }
 0xcf3   : > { %v2140_v27 = vpop.f32.mrf.mxu0 }
 0xcf4   : > { %v2147_v46 = vsel %vm859_vm2, %v2140_v27, -inf }
 0xcf5   : > { %2148 = vmax.xlane.f32.xlu1 %v2147_v46  ;;  %v3957_v47 = vpop.f32.mrf.mxu0 }
 0xcf7   : > { %v2143_v48 = vpop.f32.mrf.mxu0 }
 0xcf8   : > { %v2150_v49 = vsel %vm859_vm2, %v2143_v48, -inf }
 0xcf9   : > { %v3958_v52 = vpop.f32.mrf.mxu0  ;;  %2151 = vmax.xlane.f32.xlu0 %v2150_v49 }
 0xcfa   : > { %v4173_v52 = vld [vmem:[#allocation9 + $0x240] ss:$40 sps:$4 sm:$0xff]  }
 0xcfd   : > { %v1845_v60 = vpop.f32.mrf.mxu1 }
 0xcff   : > { %v3921_v50 = vpop.f32.mrf.mxu1 }
 0xd00   : > { %v1980_v54 = vpop.xlane.xlu0 %1979  ;;  %v4175_v50 = vld [vmem:[#allocation9 + $0x1f0] ss:$40 sps:$4 sm:$0xff]  }
 0xd01   : > { %4333 = vrcp.f32 %v1980_v54  ;;  %v1848_v55 = vpop.f32.mrf.mxu1  ;;  %v4177_v54 = vld [vmem:[#allocation9 + $0x1a0] ss:$40 sps:$4 sm:$0xff]  }
 0xd02   : > { %v1854_v4 = vpack.c.bf16 %v1848_v55, %v1845_v60  ;;  %v4179_v55 = vld [vmem:[#allocation9 + $0x150] ss:$40 sps:$4 sm:$0xff]  }
 0xd03   : > { %v3922_v56 = vpop.f32.mrf.mxu1 }
 0xd04   : > { %3926 = vmatmul.mubr.msk.bf16.vlgmr.msra.gmra.mxu1 %vm808_vm1, %v1854_v4  ;;  %v1987_v58 = vpop.permute.xlu0 %1986  ;;  %v4181_v4 = vld [vmem:[#allocation9 + $0x100] ss:$40 sps:$4 sm:$0xff]   ;;  %v4182_v56 = vld [vmem:[#allocation9 + $0x64] ss:$40 sps:$4 sm:$0xff]  }
 0xd05   : > { %3938 = vmatpush3.bf16.msra.mxu1 %v1989_v57  ;;  %3941 = vmatprep.mubr.msk.bf16.mxu1 %vm4620_vm0, %v4618_v37  ;;  %v4183_v57 = vld [vmem:[#allocation9 + $0xb0] ss:$40 sps:$4 sm:$0xff]  }
 0xd06   : > { %3939 = vmatprep.subr.bf16.mxu1 %v4618_v37 }
 0xd09   : > { %3940 = vmatpush3.bf16.msra.mxu1 %v1987_v58  ;;  %v4184_v58 = vld [vmem:[#allocation9 + $0x14] ss:$40 sps:$4 sm:$0xff]  }
 0xd0a   : > { %3945 = vmatprep.subr.bf16.mxu1 %v4618_v37 }
 0xd0e   : > { %v4334_v61 = vpop.eup %4333 }
 0xd0f   : > { %v1984_v63 = vmul.f32 %v4334_v61, %v4330_v41  ;;  %v4172_v41 = vld [vmem:[#allocation9 + $0x1f4] ss:$40 sps:$4 sm:$0xff]  }
 0xd10   : > { %3976 = vmatpush3.bf16.msra.mxu0 %v4172_v41  ;;  %v5204_v61 = vld [vmem:[%s4825_s5] sm:$0xff] }
 0xd11   : > { %v1985_v1 = vpack.c.bf16 %v1984_v63, %v1983_v62  ;;  %3977 = vmatprep.subr.bf16.mxu0 %v4618_v37  ;;  %v5207_v62 = vld [vmem:[%s4825_s5 + $0x8] sm:$0xff]  ;;  %s3295_s5 = scalar_lea.sflag [#allocation5], %s4819_s0 }
 0xd12   : > { %v2306_v63 = vpack.c.bf16 %v5207_v62, %v5204_v61 }
 0xd13   : > { %3942 = vmatmul.mubr.msk.bf16.vlgmr.msra.gmra.mxu1 %vm859_vm2, %v1985_v1  ;;  %v4186_v1 = vld [vmem:[#allocation9 + $0x10] ss:$40 sps:$4 sm:$0xff]  }
 0xd14   : > { %3947 = vmatprep.mubr.msk.bf16.mxu1 %vm4620_vm0, %v4618_v37  ;;  %3946 = vmatpush3.bf16.msra.mxu1 %v4169_v2  ;;  %v3539_v2 = vld [vmem:[#allocation8 + $0x7] ss:$0 sm:$0xff] }
 0xd15   : > { %3959 = vmatprep.subr.bf16.mxu1 %v4618_v37  ;;  %3978 = vmatpush3.bf16.msra.mxu0 %v4174_v8 }
 0xd16   : > { %3979 = vmatprep.subr.bf16.mxu0 %v4618_v37 }
 0xd19   : > { %3980 = vmatpush3.bf16.msra.mxu0 %v4176_v13 }
 0xd1a   : > { %3981 = vmatprep.subr.bf16.mxu0 %v4618_v37 }
 0xd1d   : > { %3982 = vmatpush3.bf16.msra.mxu0 %v4178_v42 }
 0xd1e   : > { %3983 = vmatprep.subr.bf16.mxu0 %v4618_v37 }
 0xd7e   : > { %v2149_v3 = vpop.xlane.xlu1 %2148 }
 0xd7f   : > { %v2153_v7 = vsub.f32 %v2140_v27, %v2149_v3 }
 0xd81   : > { %v2155_v9 = vmul.f32 1.442695, %v2153_v7 }
 0xd82   : > { %v2152_v10 = vpop.xlane.xlu0 %2151 }
 0xd83   : > { %4335 = vpow2.f32 %v2155_v9  ;;  %v2154_v15 = vsub.f32 %v2143_v48, %v2152_v10 }
 0xd85   : > { %v2157_v11 = vmul.f32 1.442695, %v2154_v15  ;;  %v3540_v15 = vld [vmem:[#allocation8 + $0x8] ss:$0 sm:$0xff] }
 0xd87   : > { %4337 = vpow2.f32 %v2157_v11 }
 0xd90   : > { %v4336_v16 = vpop.eup %4335 }
 0xd91   : > { %v2159_v17 = vsel %vm859_vm2, %v4336_v16, 0.0 }
 0xd92   : > { %2160 = vadd.xlane.f32.xlu1 %v2159_v17 }
 0xd94   : > { %v4338_v18 = vpop.eup %4337 }
 0xd95   : > { %v2162_v21 = vsel %vm859_vm2, %v4338_v18, 0.0 }
 0xd96   : > { %2163 = vadd.xlane.f32.xlu0 %v2162_v21 }
 0xda3   : > { %2172 = vrot.lane.b32.xlu1 %v4899_v0, %s4627_s8 }
 0xdac   : > { %2170 = vrot.lane.b32.xlu0 %v4908_v5, %s4627_s8 }
 0xdc4   : > { %v1898_v22 = vpop.f32.mrf.mxu1 }
 0xdc5   : > { %v1905_v23 = vadd.f32 %v1898_v22, %v1721_v20  ;;  %v4180_v20 = vld [vmem:[#allocation9 + $0xb4] ss:$40 sps:$4 sm:$0xff]  }
 0xdc6   : > { %v3927_v14 = vpop.f32.mrf.mxu1  ;;  %3984 = vmatpush3.bf16.msra.mxu0 %v4180_v20 }
 0xdc7   : > { %3985 = vmatprep.subr.bf16.mxu0 %v4618_v37 }
 0xdc8   : > { %v1901_v24 = vpop.f32.mrf.mxu1 }
 0xdc9   : > { %v1906_v25 = vadd.f32 %v1901_v24, %v1722_v44 }
 0xdca   : > { %v3928_v29 = vpop.f32.mrf.mxu1  ;;  %3986 = vmatpush3.bf16.msra.mxu0 %v4182_v56 }
 0xdcb   : > { %3987 = vmatprep.subr.bf16.mxu0 %v4618_v37 }
 0xdce   : > { %3988 = vmatpush3.bf16.msra.mxu0 %v4184_v58 }
 0xdd1   : > { %3990 = vmatmul.mubr.bf16.vlgmr.msra.gmra.mxu0 %v2306_v63 }
 0xdd2   : > { %2844 = vmatprep.mubr.bf16.mxu0 %v4619_v51 }
 0xdd3   : > { %v2029_v30 = vpop.f32.mrf.mxu1 }
 0xdd5   : > { %v3943_v26 = vpop.f32.mrf.mxu1 }
 0xdd6   : > { %v3557_v26 = vld [vmem:[#allocation8 + $0x9] ss:$0 sm:$0xff] }
 0xdd7   : > { %v2032_v31 = vpop.f32.mrf.mxu1 }
 0xdd8   : > { %v2038_v32 = vpack.c.bf16 %v2032_v31, %v2029_v30 }
 0xdd9   : > { %v3944_v12 = vpop.f32.mrf.mxu1 }
 0xdda   : > { %3948 = vmatmul.mubr.msk.bf16.vlgmr.msra.gmra.mxu1 %vm808_vm1, %v2038_v32 }
 0xddb   : > { %3963 = vmatprep.mubr.msk.bf16.mxu1 %vm4620_vm0, %v4618_v37 }
 0xe1b   : > { %v2161_v0 = vpop.xlane.xlu1 %2160 }
 0xe1c   : > { %4339 = vrcp.f32 %v2161_v0 }
 0xe1f   : > { %v2173_v33 = vpop.permute.xlu1 %2172  ;;  %v2164_v5 = vpop.xlane.xlu0 %2163 }
 0xe20   : > { %4341 = vrcp.f32 %v2164_v5  ;;  %3960 = vmatpush3.bf16.msra.mxu1 %v2173_v33 }
 0xe21   : > { %3961 = vmatprep.subr.bf16.mxu1 %v4618_v37 }
 0xe23   : > { %v2171_v34 = vpop.permute.xlu0 %2170 }
 0xe24   : > { %3962 = vmatpush3.bf16.msra.mxu1 %v2171_v34 }
 0xe25   : > { %3967 = vmatprep.subr.bf16.mxu1 %v4618_v37 }
 0xe29   : > { %v4340_v19 = vpop.eup %4339 }
 0xe2a   : > { %v2167_v36 = vmul.f32 %v4340_v19, %v4336_v16 }
 0xe2d   : > { %v4342_v35 = vpop.eup %4341 }
 0xe2e   : > { %v2168_v6 = vmul.f32 %v4342_v35, %v4338_v18 }
 0xe30   : > { %v2169_v40 = vpack.c.bf16 %v2168_v6, %v2167_v36 }
 0xe32   : > { %3964 = vmatmul.mubr.msk.bf16.vlgmr.msra.gmra.mxu1 %vm859_vm2, %v2169_v40 }
 0xe33   : > { %3969 = vmatprep.mubr.msk.bf16.mxu1 %vm4620_vm0, %v4618_v37  ;;  %3968 = vmatpush3.bf16.msra.mxu1 %v4170_v38  ;;  %v3558_v38 = vld [vmem:[#allocation8 + $0xa] ss:$0 sm:$0xff] }
 0xe34   : > { %3993 = vmatprep.subr.bf16.mxu1 %v4618_v37 }
 0xe91   : > { %v2405_v24 = vpop.f32.mrf.mxu0 }
 0xe9a   : > { %v2082_v43 = vpop.f32.mrf.mxu1 }
 0xe9b   : > { %v2089_v28 = vadd.f32 %v2082_v43, %v1905_v23 }
 0xe9c   : > { %v3949_v44 = vpop.f32.mrf.mxu1 }
 0xe9e   : > { %v2085_v45 = vpop.f32.mrf.mxu1 }
 0xe9f   : > { %v2090_v27 = vadd.f32 %v2085_v45, %v1906_v25  ;;  %v3991_v25 = vpop.f32.mrf.mxu0 }
 0xea0   : > { %v3950_v46 = vpop.f32.mrf.mxu1  ;;  %v4195_v25 = vld [vmem:[#allocation9 + $0x1fc] ss:$40 sps:$4 sm:$0xff]  }
 0xea1   : > { %v2408_v29 = vpop.f32.mrf.mxu0 }
 0xea3   : > { %v3992_v30 = vpop.f32.mrf.mxu0 }
 0xea4   : > { %v4193_v30 = vld [vmem:[#allocation9 + $0x1f8] ss:$40 sps:$4 sm:$0xff]  }
 0xef2   : > { %v2213_v47 = vpop.f32.mrf.mxu1 }
 0xef4   : > { %v3965_v48 = vpop.f32.mrf.mxu1 }
 0xef6   : > { %v2216_v49 = vpop.f32.mrf.mxu1 }
 0xef7   : > { %v2222_v53 = vpack.c.bf16 %v2216_v49, %v2213_v47 }
 0xef8   : > { %v3966_v60 = vpop.f32.mrf.mxu1 }
 0xef9   : > { %3970 = vmatmul.mubr.msk.bf16.vlgmr.msra.gmra.mxu1 %vm808_vm1, %v2222_v53 }
 0xefa   : > { %3994 = vmatpush3.bf16.msra.mxu1 %v4173_v52  ;;  %4009 = vmatprep.mubr.msk.bf16.mxu1 %vm4620_vm0, %v4618_v37 }
 0xefb   : > { %3995 = vmatprep.subr.bf16.mxu1 %v4618_v37 }
 0xefe   : > { %3996 = vmatpush3.bf16.msra.mxu1 %v4175_v50 }
 0xeff   : > { %3997 = vmatprep.subr.bf16.mxu1 %v4618_v37 }
 0xf02   : > { %3998 = vmatpush3.bf16.msra.mxu1 %v4177_v54 }
 0xf03   : > { %3999 = vmatprep.subr.bf16.mxu1 %v4618_v37 }
 0xf06   : > { %4000 = vmatpush3.bf16.msra.mxu1 %v4179_v55 }
 0xf07   : > { %4001 = vmatprep.subr.bf16.mxu1 %v4618_v37 }
 0xf0a   : > { %4002 = vmatpush3.bf16.msra.mxu1 %v4181_v4 }
 0xf0b   : > { %4003 = vmatprep.subr.bf16.mxu1 %v4618_v37 }
 0xf0e   : > { %4004 = vmatpush3.bf16.msra.mxu1 %v4183_v57 }
 0xf0f   : > { %4005 = vmatprep.subr.bf16.mxu1 %v4618_v37 }
 0xf12   : > { %4006 = vmatpush3.bf16.msra.mxu1 %v4185_v59 }
 0xf13   : > { %4007 = vmatprep.subr.bf16.mxu1 %v4618_v37 }
 0xf16   : > { %4008 = vmatpush3.bf16.msra.mxu1 %v4186_v1 }
 0xfb9   : > { %v2266_v3 = vpop.f32.mrf.mxu1 }
 0xfba   : > { %v2273_v7 = vadd.f32 %v2266_v3, %v2089_v28  ;;  %v3559_v28 = vld [vmem:[#allocation8 + $0xd] ss:$0 sm:$0xff] }
 0xfbb   : > { %v3971_v9 = vpop.f32.mrf.mxu1 }
 0xfbc   : > { %v2279_v10 = vadd.f32 %v3539_v2, %v2273_v7 }
 0xfbd   : > { %v2269_v11 = vpop.f32.mrf.mxu1 }
 0xfbe   : > { %v2274_v16 = vadd.f32 %v2269_v11, %v2090_v27  ;;  %v2285_v18 = vmul.f32 %v3540_v15, %v2279_v10  ;;  %v4187_v11 = vld [vmem:[#allocation9 + $0x248] ss:$40 sps:$4 sm:$0xff]  }
 0xfbf   : > { %v3972_v17 = vpop.f32.mrf.mxu1 }
 0xfc0   : > { %v2280_v21 = vadd.f32 %v3539_v2, %v2274_v16  ;;  %v2287_v23 = vadd.f32 %v5204_v61, %v2285_v18  ;;  %v4189_v16 = vld [vmem:[#allocation9 + $0x24c] ss:$40 sps:$4 sm:$0xff]   ;;  %v4190_v17 = vld [vmem:[#allocation9 + $0x250] ss:$40 sps:$4 sm:$0xff]  }
 0xfc1   : > { %v4192_v18 = vld [vmem:[#allocation9 + $0x254] ss:$40 sps:$4 sm:$0xff]   ;;  %2812 = vmatprep.subr.bf16.mxu0 %v4189_v16 }
 0xfc2   : > { %v2286_v22 = vmul.f32 %v3540_v15, %v2280_v21  ;;  %2855 = vmatprep.subr.bf16.mxu1 %v4192_v18  ;;  %2813 = vmatpush1.bf16.msra.mxu0 %v4187_v11  ;;  %v4240_v11 = vld [vmem:[#allocation11 + $0xf0] sm:$0xff]   ;;  %v4243_v18 = vld [vmem:[#allocation11 + $0x68] sm:$0xff]  }
 0xfc3   : > { %2814 = vmatprep.subr.bf16.mxu0 %v4195_v25  ;;  %v4241_v16 = vld [vmem:[#allocation11 + $0x30] sm:$0xff]   ;;  %v4252_v25 = vld [vmem:[#allocation11 + $0xd8] sm:$0xff]  }
 0xfc4   : > { %v5215_v37 = vadd.f32 %v5207_v62, %v2286_v22 }
 0xfc6   : > { %v2289_v14 = vpack.c.bf16 %v5215_v37, %v2287_v23  ;;  %2815 = vmatpush1.bf16.msra.mxu0 %v4193_v30  ;;  %v4254_v30 = vld [vmem:[#allocation11 + $0x98] sm:$0xff]  }
 0xfc8   : > { %4010 = vmatmul.mubr.bf16.vlgmr.msra.gmra.mxu1 %v2289_v14 }
 0xfc9   : > { %2887 = vmatprep.mubr.bf16.mxu1 %v4619_v51  ;;  %2856 = vmatpush1.bf16.msra.mxu1 %v4190_v17  ;;  %v4242_v17 = vld [vmem:[#allocation11 + $0xb0] sm:$0xff]  }
0x1088   : > { %v2494_v31 = vpop.f32.mrf.mxu1 }
0x1089   : > { %v2495_v32 = vadd.f32 %v2494_v31, %v2405_v24  ;;  %v4201_v31 = vld [vmem:[#allocation9 + $0x1ac] ss:$40 sps:$4 sm:$0xff]  }
0x108a   : > { %v4011_v12 = vpop.f32.mrf.mxu1  ;;  %2816 = vmatprep.subr.bf16.mxu0 %v4201_v31  ;;  %v4256_v31 = vld [vmem:[#allocation11 + $0xd0] sm:$0xff]  }
0x108b   : > { %v2505_v0 = vadd.f32 %v3557_v26, %v2495_v32  ;;  %v4204_v32 = vld [vmem:[#allocation9 + $0x1b4] ss:$40 sps:$4 sm:$0xff]   ;;  %v4199_v12 = vld [vmem:[#allocation9 + $0x1a8] ss:$40 sps:$4 sm:$0xff]  }
0x108c   : > { %v2497_v33 = vpop.f32.mrf.mxu1  ;;  %2817 = vmatpush1.bf16.msra.mxu0 %v4199_v12  ;;  %v4258_v12 = vld [vmem:[#allocation11 + $0x90] sm:$0xff]  }
0x108d   : > { %v2509_v5 = vmul.f32 0.70710677, %v2505_v0  ;;  %v2498_v34 = vadd.f32 %v2497_v33, %v2408_v29  ;;  %v2507_v40 = vmul.f32 0.5, %v2505_v0  ;;  %v4198_v29 = vld [vmem:[#allocation9 + $0x204] ss:$40 sps:$4 sm:$0xff]  }
0x108e   : > { %v4012_v19 = vpop.f32.mrf.mxu1  ;;  %2857 = vmatprep.subr.bf16.mxu1 %v4198_v29  ;;  %v4202_v0 = vld [vmem:[#allocation9 + $0x1b0] ss:$40 sps:$4 sm:$0xff]  }
0x108f   : > { %4343 = verf.f32 %v2509_v5  ;;  %v2506_v35 = vadd.f32 %v3557_v26, %v2498_v34  ;;  %v4196_v26 = vld [vmem:[#allocation9 + $0x200] ss:$40 sps:$4 sm:$0xff]   ;;  %v4207_v5 = vld [vmem:[#allocation9 + $0x15c] ss:$40 sps:$4 sm:$0xff]  }
0x1090   : > { %2858 = vmatpush1.bf16.msra.mxu1 %v4196_v26  ;;  %v4205_v33 = vld [vmem:[#allocation9 + $0x158] ss:$40 sps:$4 sm:$0xff]   ;;  %v4210_v19 = vld [vmem:[#allocation9 + $0x164] ss:$40 sps:$4 sm:$0xff]   ;;  %2818 = vmatprep.subr.bf16.mxu0 %v4207_v5  ;;  %v4255_v26 = vld [vmem:[#allocation11 + $0x50] sm:$0xff]  }
0x1091   : > { %v2510_v36 = vmul.f32 0.70710677, %v2506_v35  ;;  %v2508_v8 = vmul.f32 0.5, %v2506_v35  ;;  %2859 = vmatprep.subr.bf16.mxu1 %v4204_v32  ;;  %v4208_v34 = vld [vmem:[#allocation9 + $0x160] ss:$40 sps:$4 sm:$0xff]   ;;  %2819 = vmatpush1.bf16.msra.mxu0 %v4205_v33  ;;  %v4253_v29 = vld [vmem:[#allocation11 + $0x18] sm:$0xff]  }
0x1092   : > { %v4213_v35 = vld [vmem:[#allocation9 + $0x10c] ss:$40 sps:$4 sm:$0xff]  }
0x1093   : > { %4345 = verf.f32 %v2510_v36  ;;  %v4216_v36 = vld [vmem:[#allocation9 + $0x114] ss:$40 sps:$4 sm:$0xff]   ;;  %2820 = vmatprep.subr.bf16.mxu0 %v4213_v35  ;;  %v4260_v33 = vld [vmem:[#allocation11 + $0xc8] sm:$0xff]   ;;  %v4264_v35 = vld [vmem:[#allocation11 + $0xc0] sm:$0xff]  }
0x1094   : > { %2860 = vmatpush1.bf16.msra.mxu1 %v4202_v0  ;;  %v4257_v32 = vld [vmem:[#allocation11 + $0x10] sm:$0xff]   ;;  %v4259_v0 = vld [vmem:[#allocation11 + $0x48] sm:$0xff]  }
0x1095   : > { %2861 = vmatprep.subr.bf16.mxu1 %v4210_v19  ;;  %v4261_v5 = vld [vmem:[#allocation11 + $0x8] sm:$0xff]   ;;  %v4263_v19 = vld [vmem:[#allocation11 + $0x40] sm:$0xff]  }
0x1098   : > { %2862 = vmatpush1.bf16.msra.mxu1 %v4208_v34  ;;  %v4262_v34 = vld [vmem:[#allocation11 + $0x88] sm:$0xff]  }
0x1099   : > { %2863 = vmatprep.subr.bf16.mxu1 %v4216_v36  ;;  %v4265_v36 = vld [vmem:[#allocation11] sm:$0xff]  }
0x109c   : > { %v4344_v6 = vpop.eup %4343 }
0x109d   : > { %v2513_v51 = vadd.f32 1.0, %v4344_v6  ;;  %v4211_v6 = vld [vmem:[#allocation9 + $0x108] ss:$40 sps:$4 sm:$0xff]  }
0x109e   : > { %2821 = vmatpush1.bf16.msra.mxu0 %v4211_v6  ;;  %v4266_v6 = vld [vmem:[#allocation11 + $0x80] sm:$0xff]  }
0x109f   : > { %v2515_v39 = vmul.f32 %v2513_v51, %v2507_v40  ;;  %v4214_v40 = vld [vmem:[#allocation9 + $0x110] ss:$40 sps:$4 sm:$0xff]   ;;  %v4219_v51 = vld [vmem:[#allocation9 + $0xbc] ss:$40 sps:$4 sm:$0xff]  }
0x10a0   : > { %v4346_v41 = vpop.eup %4345  ;;  %2864 = vmatpush1.bf16.msra.mxu1 %v4214_v40  ;;  %2822 = vmatprep.subr.bf16.mxu0 %v4219_v51  ;;  %v2632_v40 = vlaneseq }
0x10a1   : > { %v2521_v13 = vmul.f32 %v3558_v38, %v2515_v39  ;;  %v2514_v42 = vadd.f32 1.0, %v4346_v41  ;;  %v4217_v39 = vld [vmem:[#allocation9 + $0xb8] ss:$40 sps:$4 sm:$0xff]  }
0x10a2   : > { %v4220_v41 = vld [vmem:[#allocation9 + $0xc0] ss:$40 sps:$4 sm:$0xff]   ;;  %2823 = vmatpush1.bf16.msra.mxu0 %v4217_v39  ;;  %v2633_v51 = vshrl.u32 %v2632_v40, 7 }
0x10a3   : > { %2523 = vadd.xlane.f32.xlu1 %v2521_v13  ;;  %v2516_v20 = vmul.f32 %v2514_v42, %v2508_v8  ;;  %v4225_v8 = vld [vmem:[#allocation9 + $0x6c] ss:$40 sps:$4 sm:$0xff]   ;;  %v4223_v42 = vld [vmem:[#allocation9 + $0x68] ss:$40 sps:$4 sm:$0xff]  }
0x10a4   : > { %v4228_v13 = vld [vmem:[#allocation9 + $0x74] ss:$40 sps:$4 sm:$0xff]   ;;  %2824 = vmatprep.subr.bf16.mxu0 %v4225_v8  ;;  %v2642_v39 = vsub.s32 2, %v2633_v51  ;;  %v2638_v8 = vsub.s32 1, %v2633_v51 }
0x10a5   : > { %v2522_v43 = vmul.f32 %v3558_v38, %v2516_v20  ;;  %v4222_v38 = vld [vmem:[#allocation9 + $0xc4] ss:$40 sps:$4 sm:$0xff]   ;;  %v4226_v20 = vld [vmem:[#allocation9 + $0x70] ss:$40 sps:$4 sm:$0xff]  }
0x10a6   : > { %2865 = vmatprep.subr.bf16.mxu1 %v4222_v38  ;;  %2825 = vmatpush1.bf16.msra.mxu0 %v4223_v42  ;;  %v2634_v38 = vsub.s32 0, %v2633_v51 }
0x10a7   : > { %2525 = vadd.xlane.f32.xlu0 %v2522_v43  ;;  %2866 = vmatpush1.bf16.msra.mxu1 %v4220_v41  ;;  %v4231_v43 = vld [vmem:[#allocation9 + $0x1c] ss:$40 sps:$4 sm:$0xff]   ;;  %v2630_v41 = vld [vmem:[%s5304_s3] sm:$0xf] }
0x10a8   : > { %2867 = vmatprep.subr.bf16.mxu1 %v4228_v13  ;;  %2826 = vmatprep.subr.bf16.mxu0 %v4231_v43  ;;  %v2646_v13 = vsub.s32 3, %v2633_v51  ;;  %v2635_v42 = vrot.slane %v2630_v41, %v2634_v38 }
0x10ab   : > { %2868 = vmatpush1.bf16.msra.mxu1 %v4226_v20  ;;  %v2643_v20 = vrot.slane %v2630_v41, %v2642_v39 }
0x112c   : > { %v2524_v44 = vpop.xlane.xlu1 %2523 }
0x112d   : > { %v2531_v45 = vadd.f32 %v3559_v28, %v2524_v44  ;;  %v4229_v44 = vld [vmem:[#allocation9 + $0x18] ss:$40 sps:$4 sm:$0xff]  }
0x112e   : > { %2827 = vmatpush1.bf16.msra.mxu0 %v4229_v44  ;;  %v2639_v44 = vrot.slane %v2630_v41, %v2638_v8 }
0x112f   : > { %v2533_v27 = vsub.f32 0.0, %v2531_v45  ;;  %v4232_v45 = vld [vmem:[#allocation9 + $0x20] ss:$40 sps:$4 sm:$0xff]  }
0x1130   : > { %v2526_v46 = vpop.xlane.xlu0 %2525 }
0x1131   : > { %v2535_v47 = vmul.f32 1.442695, %v2533_v27  ;;  %v2532_v48 = vadd.f32 %v3559_v28, %v2526_v46  ;;  %v4234_v28 = vld [vmem:[#allocation9 + $0x24] ss:$40 sps:$4 sm:$0xff]  }
0x1132   : > { %2869 = vmatprep.subr.bf16.mxu1 %v4234_v28 }
0x1133   : > { %4347 = vpow2.f32 %v2535_v47  ;;  %v2534_v49 = vsub.f32 0.0, %v2532_v48  ;;  %2870 = vmatpush1.bf16.msra.mxu1 %v4232_v45  ;;  %v2647_v45 = vrot.slane %v2630_v41, %v2646_v13 }
0x1135   : > { %v2537_v52 = vmul.f32 1.442695, %v2534_v49 }
0x1137   : > { %4349 = vpow2.f32 %v2537_v52 }
0x1140   : > { %v4348_v53 = vpop.eup %4347 }
0x1141   : > { %v2539_v60 = vadd.f32 1.0, %v4348_v53 }
0x1143   : > { %4351 = vrcp.f32 %v2539_v60 }
0x1144   : > { %v4350_v50 = vpop.eup %4349 }
0x1145   : > { %v2540_v54 = vadd.f32 1.0, %v4350_v50 }
0x1147   : > { %4353 = vrcp.f32 %v2540_v54 }
0x1150   : > { %v4352_v55 = vpop.eup %4351 }
0x1151   : > { %2545 = vperm.xlu1 %4129, %v4352_v55   ;;  %v2555_v4 = vsub.f32 1.0, %v4352_v55  ;;  %v4377_v55 = vld [vmem:[#allocation8] ss:$0 sm:$0xff] }
0x1154   : > { %v4354_v56 = vpop.eup %4353 }
0x1155   : > { %2559 = vperm.xlu1 %4129, %v2555_v4   ;;  %2550 = vperm.xlu0 %4130, %v4354_v56   ;;  %v2556_v57 = vsub.f32 1.0, %v4354_v56 }
0x1159   : > { %2564 = vperm.xlu1 %4129, %v2556_v57   ;;  %v4378_v57 = vld [vmem:[#allocation8 + $0x1] ss:$0 sm:$0xff] }
0x11cc   : > { %v2546_v58 = vpop.permute.xlu1 %2545 }
0x11cd   : > { %v2553_v63 = vmul.f32 %v2546_v58, %v2287_v23 }
0x11d0   : > { %v2560_v59 = vpop.permute.xlu1 %2559  ;;  %v2551_v2 = vpop.permute.xlu0 %2550 }
0x11d1   : > { %v2567_v1 = vmul.f32 %v5204_v61, %v2560_v59  ;;  %v2554_v9 = vmul.f32 %v2551_v2, %v5215_v37  ;;  %v4236_v2 = vld [vmem:[#allocation11 + $0xf8] sm:$0xff]  }
0x11d2   : > { %3755 = vmatprep.subr.bf16.mxu1 %v4236_v2 }
0x11d3   : > { %v5220_v3 = vadd.f32 %v2567_v1, %v2553_v63  ;;  %v4235_v1 = vld [vmem:[#allocation11 + $0x78] sm:$0xff]  }
0x11d4   : > { %v2565_v7 = vpop.permute.xlu1 %2564  ;;  %3733 = vmatprep.subr.bf16.mxu0 %v4235_v1 }
0x11d5   : > { %v2568_v10 = vmul.f32 %v5207_v62, %v2565_v7  ;;  %2571 = vadd.xlane.f32.xlu1 %v5220_v3  ;;  %v4237_v7 = vld [vmem:[#allocation11 + $0x38] sm:$0xff]  }
0x11d7   : > { %v5225_v15 = vadd.f32 %v2568_v10, %v2554_v9  ;;  %v4238_v9 = vld [vmem:[#allocation11 + $0xb8] sm:$0xff]   ;;  %v4239_v10 = vld [vmem:[#allocation11 + $0x70] sm:$0xff]  }
0x11d9   : > { %2573 = vadd.xlane.f32.xlu0 %v5225_v15 }
0x125e   : > { %v2572_v61 = vpop.xlane.xlu1 %2571 }
0x125f   : > { %v2575_v21 = vmul.f32 0.0078125, %v2572_v61  ;;  %v4244_v61 = vld [vmem:[#allocation11 + $0xe8] sm:$0xff]  }
0x1261   : > { %v5229_v22 = vsub.f32 %v5220_v3, %v2575_v21  ;;  %v4245_v21 = vld [vmem:[#allocation11 + $0x28] sm:$0xff]  }
0x1262   : > { %v2574_v62 = vpop.xlane.xlu0 %2573 }
0x1263   : > { %v2576_v23 = vmul.f32 0.0078125, %v2574_v62  ;;  %v2579_v37 = vmul.f32 %v5229_v22, %v5229_v22  ;;  %v4247_v62 = vld [vmem:[#allocation11 + $0x60] sm:$0xff]  }
0x1265   : > { %v5234_v14 = vsub.f32 %v5225_v15, %v2576_v23  ;;  %2581 = vadd.xlane.f32.xlu1 %v2579_v37  ;;  %v4248_v23 = vld [vmem:[#allocation11 + $0xe0] sm:$0xff]  }
0x1266   : > { %v4249_v37 = vld [vmem:[#allocation11 + $0x20] sm:$0xff]  }
0x1267   : > { %v2580_v24 = vmul.f32 %v5234_v14, %v5234_v14 }
0x1269   : > { %2583 = vadd.xlane.f32.xlu1 %v2580_v24  ;;  %v4251_v24 = vld [vmem:[#allocation11 + $0x58] sm:$0xff]  }
0x12ee   : > { %v2582_v27 = vpop.xlane.xlu1 %2581 }
0x12ef   : > { %v2585_v46 = vmul.f32 0.0078125, %v2582_v27 }
0x12f1   : > { %v2587_v47 = vadd.f32 1e-05, %v2585_v46 }
0x12f2   : > { %v2584_v48 = vpop.xlane.xlu1 %2583 }
0x12f3   : > { %4355 = vrsqrt.f32 %v2587_v47  ;;  %v2586_v49 = vmul.f32 0.0078125, %v2584_v48 }
0x12f5   : > { %v2588_v52 = vadd.f32 1e-05, %v2586_v49 }
0x12f7   : > { %4357 = vrsqrt.f32 %v2588_v52 }
0x1300   : > { %v4356_v53 = vpop.eup %4355 }
0x1301   : > { %v2591_v60 = vmul.f32 %v4356_v53, %v5229_v22  ;;  %v4246_v22 = vld [vmem:[#allocation11 + $0xa8] sm:$0xff]  }
0x1303   : > { %v2593_v4 = vmul.f32 %v4377_v55, %v2591_v60 }
0x1304   : > { %v4358_v50 = vpop.eup %4357 }
0x1305   : > { %v2592_v54 = vmul.f32 %v4358_v50, %v5234_v14  ;;  %v2595_v58 = vadd.f32 %v4378_v57, %v2593_v4  ;;  %v4250_v14 = vld [vmem:[#allocation11 + $0xa0] sm:$0xff]  }
0x1307   : > { %v2594_v56 = vmul.f32 %v4377_v55, %v2592_v54 }
0x1309   : > { %v2596_v59 = vadd.f32 %v4378_v57, %v2594_v56 }
0x130b   : > { %v2597_v63 = vpack.c.bf16 %v2596_v59, %v2595_v58 }
0x130d   : > { %2845 = vmatmul.mubr.bf16.vlgmr.msra.gmra.mxu0 %v2597_v63  ;;  %2888 = vmatmul.mubr.bf16.vlgmr.msra.gmra.mxu1 %v2597_v63 }
0x130e   : > { %3734 = vmatpush3.bf16.msra.mxu0 %v4237_v7  ;;  %3756 = vmatpush3.bf16.msra.mxu1 %v4238_v9 }
0x130f   : > { %3735 = vmatprep.subr.bf16.mxu0 %v4239_v10  ;;  %3757 = vmatprep.subr.bf16.mxu1 %v4240_v11 }
0x1312   : > { %3736 = vmatpush3.bf16.msra.mxu0 %v4241_v16  ;;  %3758 = vmatpush3.bf16.msra.mxu1 %v4242_v17 }
0x1313   : > { %3737 = vmatprep.subr.bf16.mxu0 %v4243_v18  ;;  %3759 = vmatprep.subr.bf16.mxu1 %v4244_v61 }
0x1316   : > { %3738 = vmatpush3.bf16.msra.mxu0 %v4245_v21  ;;  %3760 = vmatpush3.bf16.msra.mxu1 %v4246_v22 }
0x1317   : > { %3739 = vmatprep.subr.bf16.mxu0 %v4247_v62  ;;  %3761 = vmatprep.subr.bf16.mxu1 %v4248_v23 }
0x131a   : > { %3740 = vmatpush3.bf16.msra.mxu0 %v4249_v37  ;;  %3762 = vmatpush3.bf16.msra.mxu1 %v4250_v14 }
0x131b   : > { %3741 = vmatprep.subr.bf16.mxu0 %v4251_v24  ;;  %3763 = vmatprep.subr.bf16.mxu1 %v4252_v25 }
0x131e   : > { %3742 = vmatpush3.bf16.msra.mxu0 %v4253_v29  ;;  %3764 = vmatpush3.bf16.msra.mxu1 %v4254_v30 }
0x131f   : > { %3743 = vmatprep.subr.bf16.mxu0 %v4255_v26  ;;  %3765 = vmatprep.subr.bf16.mxu1 %v4256_v31 }
0x1322   : > { %3744 = vmatpush3.bf16.msra.mxu0 %v4257_v32  ;;  %3766 = vmatpush3.bf16.msra.mxu1 %v4258_v12 }
0x1323   : > { %3745 = vmatprep.subr.bf16.mxu0 %v4259_v0  ;;  %3767 = vmatprep.subr.bf16.mxu1 %v4260_v33 }
0x1326   : > { %3746 = vmatpush3.bf16.msra.mxu0 %v4261_v5  ;;  %3768 = vmatpush3.bf16.msra.mxu1 %v4262_v34 }
0x1327   : > { %3747 = vmatprep.subr.bf16.mxu0 %v4263_v19  ;;  %3769 = vmatprep.subr.bf16.mxu1 %v4264_v35 }
0x132a   : > { %3748 = vmatpush3.bf16.msra.mxu0 %v4265_v36  ;;  %3770 = vmatpush3.bf16.msra.mxu1 %v4266_v6 }
0x13cd   : > { %v2846_v43 = vpop.f32.mrf.mxu0  ;;  %v2889_v28 = vpop.f32.mrf.mxu1 }
0x13ce   : > { %v2847_v27 = vadd.f32 %v2846_v43, %v2635_v42  ;;  %v2890_v46 = vadd.f32 %v2889_v28, %v2643_v20 }
0x13cf   : > { %v2848_v47 = vpop.f32.mrf.mxu0  ;;  %v2891_v48 = vpop.f32.mrf.mxu1 }
0x13d0   : > { %v2906_v49 = vmul.f32 0.70710677, %v2847_v27  ;;  %v2908_v52 = vmul.f32 0.70710677, %v2890_v46  ;;  %v2849_v53 = vadd.f32 %v2848_v47, %v2639_v44  ;;  %v2892_v60 = vadd.f32 %v2891_v48, %v2647_v45 }
0x13d1   : > { %v2850_v50 = vpop.f32.mrf.mxu0  ;;  %v2893_v54 = vpop.f32.mrf.mxu1  ;;  %v2898_v22 = vmul.f32 0.5, %v2847_v27  ;;  %v2900_v35 = vmul.f32 0.5, %v2890_v46 }
0x13d2   : > { %v2851_v55 = vadd.f32 %v2850_v50, %v2635_v42  ;;  %v2894_v4 = vadd.f32 %v2893_v54, %v2643_v20  ;;  %4359 = verf.f32 %v2906_v49  ;;  %v2907_v56 = vmul.f32 0.70710677, %v2849_v53 }
0x13d3   : > { %v2852_v57 = vpop.f32.mrf.mxu0  ;;  %v2895_v58 = vpop.f32.mrf.mxu1  ;;  %4361 = verf.f32 %v2908_v52  ;;  %v2909_v59 = vmul.f32 0.70710677, %v2892_v60  ;;  %v2899_v62 = vmul.f32 0.5, %v2849_v53  ;;  %v2901_v33 = vmul.f32 0.5, %v2892_v60  ;;  %v3625_v53 = vld [vmem:[#allocation8 + $0xc] ss:$0 sm:$0xff] }
0x13d4   : > { %v2910_v63 = vmul.f32 0.70710677, %v2851_v55  ;;  %4363 = verf.f32 %v2907_v56  ;;  %v2912_v1 = vmul.f32 0.70710677, %v2894_v4  ;;  %v2853_v2 = vadd.f32 %v2852_v57, %v2639_v44  ;;  %v3592_v44 = vld [vmem:[#allocation8 + $0xb] ss:$0 sm:$0xff] }
0x13d5   : > { %v2896_v7 = vadd.f32 %v2895_v58, %v2647_v45  ;;  %4365 = verf.f32 %v2909_v59  ;;  %v2902_v29 = vmul.f32 0.5, %v2851_v55  ;;  %v2904_v32 = vmul.f32 0.5, %v2894_v4 }
0x13d6   : > { %4367 = verf.f32 %v2910_v63  ;;  %v2911_v9 = vmul.f32 0.70710677, %v2853_v2  ;;  %v2903_v12 = vmul.f32 0.5, %v2853_v2 }
0x13d7   : > { %4369 = verf.f32 %v2912_v1  ;;  %v2913_v10 = vmul.f32 0.70710677, %v2896_v7  ;;  %v2905_v34 = vmul.f32 0.5, %v2896_v7 }
0x13d8   : > { %4371 = verf.f32 %v2911_v9 }
0x13d9   : > { %4373 = verf.f32 %v2913_v10 }
0x13df   : > { %v4360_v11 = vpop.eup %4359 }
0x13e0   : > { %v4362_v16 = vpop.eup %4361  ;;  %v2922_v24 = vadd.f32 1.0, %v4360_v11 }
0x13e1   : > { %v4364_v17 = vpop.eup %4363  ;;  %v2924_v31 = vadd.f32 1.0, %v4362_v16 }
0x13e2   : > { %v4366_v18 = vpop.eup %4365  ;;  %v2923_v23 = vadd.f32 1.0, %v4364_v17  ;;  %v2930_v51 = vmul.f32 %v2922_v24, %v2898_v22 }
0x13e3   : > { %v4368_v61 = vpop.eup %4367  ;;  %v2925_v25 = vadd.f32 1.0, %v4366_v18  ;;  %v2932_v41 = vmul.f32 %v2924_v31, %v2900_v35 }
0x13e4   : > { %v4370_v21 = vpop.eup %4369  ;;  %v2926_v37 = vadd.f32 1.0, %v4368_v61  ;;  %v2931_v36 = vmul.f32 %v2923_v23, %v2899_v62 }
0x13e5   : > { %v4372_v14 = vpop.eup %4371  ;;  %v2928_v30 = vadd.f32 1.0, %v4370_v21  ;;  %v2933_v38 = vmul.f32 %v2925_v25, %v2901_v33 }
0x13e6   : > { %v4374_v26 = vpop.eup %4373  ;;  %v2927_v0 = vadd.f32 1.0, %v4372_v14  ;;  %v2934_v5 = vmul.f32 %v2926_v37, %v2902_v29 }
0x13e7   : > { %v2929_v19 = vadd.f32 1.0, %v4374_v26  ;;  %v2936_v6 = vmul.f32 %v2928_v30, %v2904_v32 }
0x13e8   : > { %v2935_v40 = vmul.f32 %v2927_v0, %v2903_v12  ;;  %v2938_v13 = vpack.c.bf16 %v2934_v5, %v2930_v51 }
0x13e9   : > { %v2937_v39 = vmul.f32 %v2929_v19, %v2905_v34  ;;  %v2940_v20 = vpack.c.bf16 %v2936_v6, %v2932_v41 }
0x13ea   : > { %v2939_v8 = vpack.c.bf16 %v2935_v40, %v2931_v36 }
0x13eb   : > { %v2941_v42 = vpack.c.bf16 %v2937_v39, %v2933_v38 }
0x13ec   : > { %3234 = vmatprep.mubr.bf16.mxu0 %v2939_v8 }
0x13ed   : > { %3275 = vmatprep.mubr.bf16.mxu1 %v2941_v42  ;;  %3235 = vmatmul.mubr.bf16.vlgmr.msra.gmra.mxu0 %v2938_v13 }
0x13ee   : > { %3276 = vmatmul.mubr.bf16.vlgmr.msra.gmra.mxu1 %v2940_v20 }
0x14ad   : > { %v3749_v43 = vpop.f32.mrf.mxu0 }
0x14ae   : > { %v3771_v28 = vpop.f32.mrf.mxu1 }
0x14af   : > { %v3750_v45 = vpop.f32.mrf.mxu0 }
0x14b0   : > { %v3751_v27 = vadd.f32 %v3750_v45, %v3749_v43  ;;  %v3772_v46 = vpop.f32.mrf.mxu1 }
0x14b1   : > { %v3752_v47 = vpop.f32.mrf.mxu0  ;;  %v3773_v49 = vadd.f32 %v3772_v46, %v3771_v28 }
0x14b2   : > { %v3237_v48 = vadd.f32 %v3751_v27, %v3592_v44  ;;  %v3774_v52 = vpop.f32.mrf.mxu1 }
0x14b3   : > { %v3753_v60 = vpop.f32.mrf.mxu0 }
0x14b4   : > { %v3278_v50 = vadd.f32 %v3773_v49, %v3237_v48  ;;  %v3754_v54 = vadd.f32 %v3753_v60, %v3752_v47  ;;  %v3775_v55 = vpop.f32.mrf.mxu1 }
0x14b5   : > { %v3776_v57 = vadd.f32 %v3775_v55, %v3774_v52 }
0x14b6   : > { %v3288_v4 = vmul.f32 %v3625_v53, %v3278_v50  ;;  %v3240_v56 = vadd.f32 %v3754_v54, %v3592_v44 }
0x14b8   : > { %v3290_v58 = vadd.f32 %v3288_v4, %v5220_v3  ;;  %v3281_v59 = vadd.f32 %v3776_v57, %v3240_v56 }
0x14ba   : > { %3292 = vst [vmem:[%s370_s18] sm:$0xff] %v3290_v58  ;;  %v3289_v63 = vmul.f32 %v3625_v53, %v3281_v59 }
0x14bc   : > { %v3291_v1 = vadd.f32 %v3289_v63, %v5225_v15 }
0x14be   : > { %3293 = vst [vmem:[%s370_s18 + $0x8] sm:$0xff] %v3291_v1 }
0x14bf   : > { %4526 = shalt.err (!%p4523_p12)
}
0x14c0   : > { %s4527_s7 = scalar_lea.hbm %s5250_s4, 256  ;;  %s4531_s29 = scalar_lea.hbm %s5307_s6, 512 }
0x14c1   : > { %p4528_p13 = scmp.ne.s32.totalorder %s5250_s4, %s4527_s7  ;;  %p4532_p3 = scmp.lt.s32.totalorder %s5250_s4, %s5307_s6 }
0x14c2   : > { %p4533_p11 = scmp.lt.s32.totalorder %s4531_s29, %s4527_s7 }
0x14c3   : > { %p4529_p0 = pnand %p4528_p13, %p4765_p10 }
0x14c4   : > { %p4534_p1 = por %p4533_p11, %p4532_p3 }
0x14c5   : > { %p4530_p5 = pneg %p4529_p0 }
0x14c7   : > { %p4535_p4 = pnand %p4534_p1, %p4530_p5 }
0x14c9   : > { %4538 = shalt.err (!%p4535_p4)
}
0x14ca   : > { %s4629_s13 = smov 128   ;;  %s4630_s17 = smov 8  }
0x14cb   : > { %4029 = dma.vmem_to_hbm [thread:$0]  (%p4765_p10), %s5252_s9, 256, %s5250_s4, %s3295_s5, %s4629_s13, %s4629_s13, %s4630_s17  }
0x14cc PF: > { %s5336_s8 = sld [smem:[#allocation19_spill]]  ;;  %s3325_s10 = sand.u32 1, %s4585_s21  }
0x14cd   : > { %s3326_s12 = scalar_lea.sflag [#allocation5], %s3325_s10 }
0x14d2   : > { %p5337_p8 = scmp.ge.s32.totalorder %s5336_s8, 2 }
0x14d4   : > { %p4049_p2 = pnand %p5337_p8, %p4711_p6 }
0x14d6   : > { %p4050_p7 = pneg %p4049_p2 }
0x14d8   : > { %4580 = dma.done.wait (%p4050_p7), %s3326_s12, 256  }
0x14d9   : > { %4582 = vsyncadd (%p4050_p7), %s3326_s12, 4294967040  ;;  %s26_s26 = sadd.s32 1, %s5336_s8   ;;  %s5338_s18 = sld [smem:[#allocation18_spill]] }
0x14da   : > { %p23_p9 = scmp.ge.s32.totalorder %s26_s26, 4   ;;  %s5339_s23 = sld [smem:[#allocation21_spill]] }
0x14db   : > { %s5340_s28 = sld [smem:[#allocation20_spill]]  ;;  %s5341_s21 = smov %s4589_s22 }
0x14dc   : > { %s5343_s24 = smov %s4601_s25 }
0x14dd   :  { %25 = sbr.rel (!%p23_p9) target bundleno = 14 (0xe), region = 118 }
0x14df   : > { %s5342_s22 = smov %s5338_s18 }
0x14e1   : > { %s5344_s25 = smov %s5340_s28 }
0x14e2   :  { %3331 = vsyncpa [#allocation4], 1 }
0x14e3   :  { %3333 = vsyncpa [#allocation4 + $0x1], 1 }
0x14e4   :  { %3334 = vsyncpa [#allocation7], 1 }
0x14e5   :  { %3336 = vsyncpa [#allocation7 + $0x1], 1 }
0x14e6   :  { %3337 = vsyncpa [#allocation10], 1 }
0x14e7   :  { %3338 = vsyncpa [#allocation5], 1 }
0x14e8   :  { %3340 = vsyncpa [#allocation5 + $0x1], 1 }

</bundles_post_ra>
